<compile_context>
chip_gen: v6e
topology: v6e:2x2x1
jax: 0.10.0
libtpu: 0.0.40
codegen_flags: <defaults>
</compile_context>

<pallas_src>
import jax
import jax.numpy as jnp
from jax.experimental import pallas as pl
from jax.experimental.pallas import tpu as pltpu

LANE = 128

# ~4 MiB per in/out buffer (f32: 8192 rows, bf16: 16384 rows). With Pallas
# double-buffering that is ~16 MiB of VMEM total.
TARGET_TILE_BYTES = 4 * 1024 * 1024
# Explicit scoped-VMEM limit: above v5e's 16 MiB default, inside v7x's 64 MiB
# physical VMEM, and trivially fine on v5e/v6e's 128 MiB physical VMEM.
VMEM_LIMIT_BYTES = 32 * 1024 * 1024
# Below this, a standalone kernel only adds a dedicated HBM round trip plus
# launch/DMA-prime overhead; XLA fuses the swish for free instead.
SMALL_BYPASS_BYTES = 512 * 1024
# Keep block rows a multiple of 32 so f32 / bf16 / 8-bit packed layouts stay
# unmasked.
ROW_ALIGN = 32


def _make_swish_kernel(beta: float, compute_in_f32: bool):
    """beta is baked in as a compile-time constant (static per nn.Module)."""

    def kernel(x_ref, o_ref):
        x = x_ref[...]
        if compute_in_f32:
            # Sub-32-bit inputs: do the math in f32 (matches the reference;
            # VPU/EUP work is fully hidden under the DMA time anyway).
            xf = x.astype(jnp.float32)
            y = xf * jax.nn.sigmoid(beta * xf)
            o_ref[...] = y.astype(o_ref.dtype)
        else:
            o_ref[...] = x * jax.nn.sigmoid(beta * x)

    return kernel


def swish(x: jax.Array, beta: float = 1.0, *, donate: bool = False) -> jax.Array:
    """Swish / SiLU with slope `beta`, computed in a Pallas TPU kernel.

    If `donate=True`, the kernel writes in place (input_output_aliases),
    halving allocator pressure for large activations the caller can give up.
    """
    if not jnp.issubdtype(x.dtype, jnp.floating):
        raise ValueError(f"swish expects a floating-point input, got {x.dtype}")

    n = x.size
    if n == 0:
        return x

    beta = float(beta)
    itemsize = jnp.dtype(x.dtype).itemsize
    compute_in_f32 = itemsize < 4

    def _jnp_swish(v):
        # Plain-XLA path; fuses into producer/consumer ops for free.
        if compute_in_f32:
            vf = v.astype(jnp.float32)
            return (vf * jax.nn.sigmoid(beta * vf)).astype(v.dtype)
        return v * jax.nn.sigmoid(beta * v)

    # Small-size bypass: a dedicated elementwise kernel can only lose here.
    if n * itemsize < SMALL_BYPASS_BYTES:
        return _jnp_swish(x)

    # Non-lane-aligned sizes (rare for conv activations): avoid the old
    # pad + slice route (extra full-array HBM passes); let XLA handle it.
    if n % LANE != 0:
        return _jnp_swish(x)

    rows = n // LANE
    x2d = x.reshape(rows, LANE)

    # Bytes-sized tiles, and never a single-block grid: split into >= 2 blocks
    # so ("parallel",) semantics shard across both v7x TensorCores. Inputs
    # reaching this point are >= 512 KiB, so rows >= 1024 and the split is
    # always legal with 32-row alignment.
    tile_rows_cap = max(ROW_ALIGN, TARGET_TILE_BYTES // (LANE * itemsize))
    half_rows = -(-rows // 2)
    half_rows_aligned = -(-half_rows // ROW_ALIGN) * ROW_ALIGN
    tile_rows = min(tile_rows_cap, half_rows_aligned)
    grid = (pl.cdiv(rows, tile_rows),)  # ragged last block is masked by Pallas

    out2d = pl.pallas_call(
        _make_swish_kernel(beta, compute_in_f32),
        out_shape=jax.ShapeDtypeStruct((rows, LANE), x.dtype),
        grid_spec=pltpu.PrefetchScalarGridSpec(
            num_scalar_prefetch=0,
            grid=grid,
            in_specs=[pl.BlockSpec((tile_rows, LANE), lambda i: (i, 0))],
            out_specs=pl.BlockSpec((tile_rows, LANE), lambda i: (i, 0)),
        ),
        compiler_params=pltpu.CompilerParams(
            dimension_semantics=("parallel",),
            vmem_limit_bytes=VMEM_LIMIT_BYTES,
        ),
        input_output_aliases=({0: 0} if donate else {}),
    )(x2d)

    return out2d.reshape(x.shape)


if __name__ == "__main__":
    key = jax.random.PRNGKey(0)
    beta = 1.0

    def ref_swish(v, b):
        vf = v.astype(jnp.float32)
        return (vf * jax.nn.sigmoid(b * vf)).astype(v.dtype)

    k1, k2, k3 = jax.random.split(key, 3)

    # 1) Small NCHW input matching the module's typical conv-VAE usage:
    #    takes the fused-XLA bypass (Pallas would only add launch overhead).
    x_small = jax.random.normal(k1, (2, 4, 16, 16), dtype=jnp.float32)
    y_small = swish(x_small, beta=beta)
    jax.block_until_ready(y_small)
    assert y_small.shape == x_small.shape and y_small.dtype == x_small.dtype
    assert jnp.allclose(y_small, ref_swish(x_small, beta), atol=1e-6, rtol=1e-5)

    # 2) Larger activation: runs the Pallas kernel with a >= 2-block grid of
    #    lane-dense tiles (evenly divides, unmasked stores).
    x_big = jax.random.normal(k2, (2, 16, 64, 128), dtype=jnp.float32)  # 1 MiB
    y_big = swish(x_big, beta=beta)
    jax.block_until_ready(y_big)
    assert y_big.shape == x_big.shape and y_big.dtype == x_big.dtype
    assert jnp.allclose(y_big, ref_swish(x_big, beta), atol=1e-6, rtol=1e-5)

    # 3) Lane-aligned but row count not a multiple of the tile: exercises the
    #    ragged last block (masked stores) in the Pallas path.
    x_ragged = jax.random.normal(k3, (2, 964, 128), dtype=jnp.float32)  # ~0.94 MiB
    y_ragged = swish(x_ragged, beta=beta)
    jax.block_until_ready(y_ragged)
    assert y_ragged.shape == x_ragged.shape and y_ragged.dtype == x_ragged.dtype
    assert jnp.allclose(y_ragged, ref_swish(x_ragged, beta), atol=1e-6, rtol=1e-5)

    print("KERNEL_OK")
</pallas_src>

<mosaic_0001>
module attributes {stable_mosaic.version = 11 : i64} {
  func.func @kernel(%arg0: i32, %arg1: memref<1024x128xf32, #tpu.memory_space<vmem>>, %arg2: memref<1024x128xf32, #tpu.memory_space<vmem>>) attributes {dimension_semantics = [#tpu.dimension_semantics<parallel>], iteration_bounds = array<i64: 2>, scalar_prefetch = 0 : i64, scratch_operands = 0 : i64, tpu.core_type = #tpu.core_type<tc>, window_params = [{transform_indices = @transform_0, window_bounds = array<i64: 1024, 128>}, {transform_indices = @transform_1, window_bounds = array<i64: 1024, 128>}]} {
    %c0 = arith.constant 0 : index
    %c0_0 = arith.constant 0 : index
    %0 = vector.load %arg1[%c0, %c0_0] : memref<1024x128xf32, #tpu.memory_space<vmem>>, vector<1024x128xf32>
    %cst = arith.constant 1.000000e+00 : f32
    %1 = vector.broadcast %cst : f32 to vector<1024x128xf32>
    %2 = arith.mulf %1, %0 : vector<1024x128xf32>
    %3 = arith.negf %2 : vector<1024x128xf32>
    %4 = math.exp %3 : vector<1024x128xf32>
    %cst_1 = arith.constant 1.000000e+00 : f32
    %5 = vector.broadcast %cst_1 : f32 to vector<1024x128xf32>
    %6 = arith.addf %5, %4 : vector<1024x128xf32>
    %7 = arith.divf %5, %6 : vector<1024x128xf32>
    %8 = arith.mulf %0, %7 : vector<1024x128xf32>
    %c0_2 = arith.constant 0 : index
    %c0_3 = arith.constant 0 : index
    %9 = vector.load %arg2[%c0_2, %c0_3] : memref<1024x128xf32, #tpu.memory_space<vmem>>, vector<1024x128xf32>
    tpu.vector_store %arg2[%c0_2, %c0_3], %8 {strides = array<i32>} : memref<1024x128xf32, #tpu.memory_space<vmem>>, vector<1024x128xf32>,
    return
  }
  func.func @transform_0(%arg0: i32) -> (i32, i32) {
    %c0_i32 = arith.constant 0 : i32
    %c0_i32_0 = arith.constant 0 : i32
    return %arg0, %c0_i32 : i32, i32
  }
  func.func @transform_1(%arg0: i32) -> (i32, i32) {
    %c0_i32 = arith.constant 0 : i32
    %c0_i32_0 = arith.constant 0 : i32
    return %arg0, %c0_i32 : i32, i32
  }
}

</mosaic_0001>

<bundles_post_ra>
// kernel: tpu_custom_call.1
= control target key start
LH: loop header
LB: loop body
LE: loop exit
PB: predicated region body
PF: predicated region fallthrough
CT: control target
= control target key end

     0   :  { %6 = vsyncpa [#allocation3], 0  ;;  %s3123_s0 = inlined_call_operand.hbm [shape: f32[2048,128], index: 0, kind: input, shape index: {}]   ;;  %s3124_s1 = inlined_call_operand.hbm [shape: f32[2048,128], index: 1, kind: output, shape index: {}]  }
   0x1   :  { %8 = vsyncpa [#allocation3 + $0x1], 0 }
   0x2   :  { %9 = vsyncpa [#allocation4], 0 }
   0x3   :  { %11 = vsyncpa [#allocation4 + $0x1], 0  ;;  %s2192_s6 = smov 0   ;;  %s2194_s7 = smov 0  }
   0x4   :  { %s2196_s8 = smov 0   ;;  %s2198_s9 = smov 0  }
   0x5 LB: > { %s2213_s10 = sadd.s32 4294967295, %s2174_s9   ;;  %s1376_s11 = sadd.s32 4294967294, %s2174_s9   ;;  %s2174_s9 = sphi %s2198_s9, %s3139_s9   ;;  %s2170_s8 = sphi %s2196_s8, %s3138_s8   ;;  %s2166_s7 = sphi %s2194_s7, %s3137_s7   ;;  %s2162_s6 = sphi %s2192_s6, %s3136_s6  }
   0x6   : > { %s2217_s12 = sadd.s32 1, %s2174_s9   ;;  %s24_s13 = sadd.s32 1, %s2170_s8 }
   0x7   : > { %s21_s14 = ssub.s32 %s2174_s9, %s2217_s12  ;;  %p31_p0 = scmp.ne.s32.totalorder %s2170_s8, %s2166_s7 }
   0x8   : > { %p22_p1 = scmp.eq.s32.totalorder %s21_s14, 0  ;;  %p32_p2 = scmp.eq.s32.totalorder %s2174_s9, 0 }
   0x9   : > { %p37_p3 = scmp.ne.s32.totalorder %s2166_s7, %s2162_s6  ;;  %p38_p4 = scmp.eq.s32.totalorder %s2213_s10, 0 }
   0xa   : > { %s2229_s15 = scalar_select %p22_p1, %s2170_s8, %s24_s13  }
   0xb   : > { %p2231_p5 = por %p32_p2, %p31_p0  ;;  %p2235_p6 = por %p38_p4, %p37_p3 }
   0xc   : > { %p61_p7 = scmp.eq.s32.totalorder %s2213_s10, 1  ;;  %p67_p8 = scmp.eq.s32.totalorder %s1376_s11, 1 }
   0xd   : > { %s3128_s17 = scalar_select %p2235_p6, 1, 0 }
   0xe   : > { %p1532_p10 = scmp.lt.s32.totalorder %s2174_s9, 2  ;;  %p2242_p11 = por %p61_p7, %p31_p0 }
   0xf   : > { %p2246_p12 = por %p67_p8, %p37_p3  ;;  %s87_s20 = sand.u32 1, %s2170_s8  }
  0x10   : > { %s3129_s18 = scalar_select %p2242_p11, 1, 0 }
  0x11   : > { %s3130_s19 = scalar_select %p2246_p12, 1, 0 }
  0x12   : > { %s1518_s21 = sshll.u32 %s2174_s9, 14  ;;  %s1379_s22 = sshll.u32 %s87_s20, 10 }
  0x13   : > { %s2255_s25 = scalar_lea.hbm %s3123_s0, %s1518_s21  ;;  %s91_s26 = scalar_lea.vmem [#allocation2], %s1379_s22 }
  0x14   : > { %s98_s27 = sshll.u32 %s91_s26, 4  ;;  %p2259_p13 = pnand %p1532_p10, %p2231_p5  ;;  %s2263_s27 = int_to_ptr.vmem [resolvable:$true] %s98_s27 }
  0x15   : > { %s2265_s29 = scalar_lea.sflag [#allocation3], %s87_s20  ;;  %s2082_s30 = scalar_lea.hbm %s2255_s25, 16384 }
  0x16   : > { %p2083_p0 = scmp.ne.s32.totalorder %s2255_s25, %s2082_s30  ;;  %p2084_p1 = pneg %p2259_p13 }
  0x17   : > { %s2087_s4 = scalar_lea.hbm %s3123_s0, 32768  ;;  %p2088_p4 = scmp.lt.s32.totalorder %s2255_s25, %s3123_s0 }
  0x18   : > { %p2085_p2 = pnand %p2084_p1, %p2083_p0  ;;  %p2089_p5 = scmp.lt.s32.totalorder %s2087_s4, %s2082_s30 }
  0x1a   : > { %p2086_p3 = pneg %p2085_p2  ;;  %p2090_p7 = por %p2089_p5, %p2088_p4 }
  0x1c   : > { %p2091_p8 = pnand %p2090_p7, %p2086_p3 }
  0x1e   : > { %2094 = shalt.err (!%p2091_p8)
}
  0x1f   : > { %s2095_s13 = scalar_lea.vmem %s2263_s27, 16384  ;;  %s2176_s14 = smov [#allocation2]  }
  0x20   : > { %p2096_p10 = scmp.ne.s32.totalorder %s2263_s27, %s2095_s13  ;;  %s2100_s16 = sshll.u32 %s2176_s14, 4  ;;  %s2101_s16 = int_to_ptr.vmem [resolvable:$false] %s2100_s16 }
  0x21   : > { %s2102_s20 = scalar_lea.vmem %s2101_s16, 32768  ;;  %p2103_p2 = scmp.lt.s32.totalorder %s2263_s27, %s2101_s16 }
  0x22   : > { %p2098_p9 = pnand %p2096_p10, %p2084_p1  ;;  %p2104_p12 = scmp.lt.s32.totalorder %s2102_s20, %s2095_s13 }
  0x24   : > { %p2099_p0 = pneg %p2098_p9  ;;  %p2105_p11 = por %p2104_p12, %p2103_p2 }
  0x26   : > { %p2106_p6 = pnand %p2105_p11, %p2099_p0 }
  0x28   : > { %2109 = shalt.err (!%p2106_p6)
}
  0x29   : > { %s2177_s21 = smov 128   ;;  %s2178_s22 = smov 8  }
  0x2a   : > { %1527 = dma.hbm_to_vmem [thread:$0]  (!%p2259_p13), %s2255_s25, 16384, %s2263_s27, %s2265_s29, %s2177_s21, %s2177_s21, %s2178_s22  }
  0x2b   : > { %p1382_p9 = scmp.ge.s32.totalorder %s2174_s9, 1  ;;  %p106_p1 = scmp.lt.s32.totalorder %s2174_s9, 3 }
  0x2d   : > { %p107_p3 = pnand %p1382_p9, %p106_p1 }
  0x2e   : > { %s2289_s23 = sand.u32 (!%p107_p3), 1, %s2166_s7   ;;  %p3132_p6 = scmp.ne.s32.totalorder (!%p107_p3), %s3128_s17, 0 }
  0x2f   : > { %110 = sbr.rel (%p107_p3) target bundleno = 341 (0x155), region = 24  ;;  %s1383_s24 = sshll.u32 (!%p107_p3), %s2289_s23, 10 }
  0x30   : > { %s113_s26 = scalar_lea.sflag (!%p107_p3), [#allocation3], %s2289_s23  ;;  %s2295_s30 = scalar_lea.vmem (!%p107_p3), [#allocation2], %s1383_s24 }
  0x34   : > { %2153 = dma.done.wait (%p3132_p6), %s113_s26, 16384  }
  0x35   : > { %2155 = vsyncadd (%p3132_p6), %s113_s26, 4294950912  ;;  %v2302_v0 = vld [vmem:[%s2295_s30] sm:$0xff]  ;;  %v2305_v1 = vld [vmem:[%s2295_s30 + $0x8] sm:$0xff]  ;;  %s2394_s17 = scalar_lea.vmem [#allocation5], %s1383_s24  ;;  %s1519_s25 = sshll.u32 %s2213_s10, 14 }
  0x36   : > { %v2308_v2 = vld [vmem:[%s2295_s30 + $0x10] sm:$0xff]  ;;  %v1385_v3 = vmul.f32 -1.442695, %v2302_v0  ;;  %v1386_v4 = vmul.f32 -1.442695, %v2305_v1  ;;  %v2314_v6 = vld [vmem:[%s2295_s30 + $0x18] sm:$0xff]  ;;  %s3074_s10 = scalar_lea.hbm %s3124_s1, %s1519_s25 }
  0x37   : > { %v1387_v5 = vmul.f32 -1.442695, %v2308_v2  ;;  %v2317_v7 = vld [vmem:[%s2295_s30 + $0x20] sm:$0xff]  ;;  %v2320_v8 = vld [vmem:[%s2295_s30 + $0x28] sm:$0xff]  ;;  %v1388_v9 = vmul.f32 -1.442695, %v2314_v6 }
  0x38   : > { %1570 = vpow2.f32 %v1385_v3  ;;  %v1389_v10 = vmul.f32 -1.442695, %v2317_v7  ;;  %v1390_v11 = vmul.f32 -1.442695, %v2320_v8  ;;  %v2326_v12 = vld [vmem:[%s2295_s30 + $0x30] sm:$0xff]  ;;  %v2329_v13 = vld [vmem:[%s2295_s30 + $0x38] sm:$0xff] }
  0x39   : > { %1572 = vpow2.f32 %v1386_v4  ;;  %v2332_v14 = vld [vmem:[%s2295_s30 + $0x40] sm:$0xff]  ;;  %v1391_v15 = vmul.f32 -1.442695, %v2326_v12  ;;  %v1392_v16 = vmul.f32 -1.442695, %v2329_v13  ;;  %v2337_v17 = vld [vmem:[%s2295_s30 + $0x48] sm:$0xff] }
  0x3a   : > { %1574 = vpow2.f32 %v1387_v5  ;;  %v2340_v18 = vld [vmem:[%s2295_s30 + $0x50] sm:$0xff]  ;;  %v1393_v19 = vmul.f32 -1.442695, %v2332_v14  ;;  %v2344_v20 = vld [vmem:[%s2295_s30 + $0x58] sm:$0xff]  ;;  %v1394_v21 = vmul.f32 -1.442695, %v2337_v17 }
  0x3b   : > { %1576 = vpow2.f32 %v1388_v9  ;;  %v2348_v22 = vld [vmem:[%s2295_s30 + $0x60] sm:$0xff]  ;;  %v1395_v23 = vmul.f32 -1.442695, %v2340_v18  ;;  %v2352_v24 = vld [vmem:[%s2295_s30 + $0x68] sm:$0xff]  ;;  %v1396_v25 = vmul.f32 -1.442695, %v2344_v20 }
  0x3c   : > { %1578 = vpow2.f32 %v1389_v10  ;;  %v2356_v26 = vld [vmem:[%s2295_s30 + $0x70] sm:$0xff]  ;;  %v1397_v27 = vmul.f32 -1.442695, %v2348_v22  ;;  %v2360_v28 = vld [vmem:[%s2295_s30 + $0x78] sm:$0xff]  ;;  %v1398_v29 = vmul.f32 -1.442695, %v2352_v24 }
  0x3d   : > { %1580 = vpow2.f32 %v1390_v11  ;;  %v1399_v30 = vmul.f32 -1.442695, %v2356_v26  ;;  %v1400_v31 = vmul.f32 -1.442695, %v2360_v28  ;;  %v2366_v57 = vld [vmem:[%s2295_s30 + $0x80] sm:$0xff]  ;;  %v2369_v60 = vld [vmem:[%s2295_s30 + $0x88] sm:$0xff] }
  0x3e   : > { %1582 = vpow2.f32 %v1391_v15  ;;  %v2372_v63 = vld [vmem:[%s2295_s30 + $0x90] sm:$0xff]  ;;  %v1401_v5 = vmul.f32 -1.442695, %v2366_v57  ;;  %v2376_v9 = vld [vmem:[%s2295_s30 + $0x98] sm:$0xff]  ;;  %v1402_v15 = vmul.f32 -1.442695, %v2369_v60 }
  0x3f   : > { %1584 = vpow2.f32 %v1392_v16  ;;  %v2380_v16 = vld [vmem:[%s2295_s30 + $0xa0] sm:$0xff]  ;;  %s1303_s27 = sshll.u32 %s2394_s17, 4  ;;  %s1290_s2 = scalar_lea.sflag [#allocation4], %s2289_s23  ;;  %s3076_s27 = int_to_ptr.vmem [resolvable:$true] %s1303_s27 }
  0x40   : > { %1586 = vpow2.f32 %v1393_v19  ;;  %s2110_s3 = scalar_lea.vmem %s3076_s27, 16384  ;;  %p3133_p12 = scmp.ne.s32.totalorder %s3129_s18, 0 }
  0x41   : > { %1588 = vpow2.f32 %v1394_v21  ;;  %p2111_p11 = scmp.ne.s32.totalorder %s3076_s27, %s2110_s3  ;;  %s2179_s4 = smov [#allocation5]  }
  0x42   : > { %1590 = vpow2.f32 %v1395_v23  ;;  %v1403_v23 = vmul.f32 -1.442695, %v2372_v63  ;;  %s2114_s5 = sshll.u32 %s2179_s4, 4  ;;  %s2115_s5 = int_to_ptr.vmem [resolvable:$false] %s2114_s5 }
  0x43   : > { %1592 = vpow2.f32 %v1396_v25  ;;  %v2385_v25 = vld [vmem:[%s2295_s30 + $0xa8] sm:$0xff]  ;;  %p2112_p13 = pnand %p2111_p11, %p3133_p12  ;;  %s2116_s11 = scalar_lea.vmem %s2115_s5, 32768 }
  0x44   : > { %1594 = vpow2.f32 %v1397_v27  ;;  %p2117_p5 = scmp.lt.s32.totalorder %s3076_s27, %s2115_s5  ;;  %p2118_p7 = scmp.lt.s32.totalorder %s2116_s11, %s2110_s3 }
  0x45   : > { %v1571_v32 = vpop.eup %1570  ;;  %1596 = vpow2.f32 %v1398_v29  ;;  %p2113_p4 = pneg %p2112_p13 }
  0x46   : > { %v1573_v33 = vpop.eup %1572  ;;  %v649_v34 = vadd.f32 1.0, %v1571_v32  ;;  %1598 = vpow2.f32 %v1399_v30  ;;  %v1404_v30 = vmul.f32 -1.442695, %v2376_v9  ;;  %p2119_p8 = por %p2118_p7, %p2117_p5 }
  0x47   : > { %v1575_v35 = vpop.eup %1574  ;;  %v650_v36 = vadd.f32 1.0, %v1573_v33  ;;  %1600 = vpow2.f32 %v1400_v31  ;;  %v2390_v31 = vld [vmem:[%s2295_s30 + $0xb0] sm:$0xff]  ;;  %v2400_v33 = vld [vmem:[%s2295_s30 + $0xb8] sm:$0xff] }
  0x48   : > { %v1577_v37 = vpop.eup %1576  ;;  %1602 = vrcp.f32 %v649_v34  ;;  %v651_v38 = vadd.f32 1.0, %v1575_v35  ;;  %p2120_p10 = pnand %p2119_p8, %p2113_p4 }
  0x49   : > { %v1579_v39 = vpop.eup %1578  ;;  %1604 = vrcp.f32 %v650_v36  ;;  %v652_v40 = vadd.f32 1.0, %v1577_v37  ;;  %v1406_v36 = vmul.f32 -1.442695, %v2385_v25  ;;  %v2406_v37 = vld [vmem:[%s2295_s30 + $0xc0] sm:$0xff] }
  0x4a   : > { %v1581_v41 = vpop.eup %1580  ;;  %1606 = vrcp.f32 %v651_v38  ;;  %v653_v42 = vadd.f32 1.0, %v1579_v39  ;;  %v1407_v39 = vmul.f32 -1.442695, %v2390_v31 }
  0x4b   : > { %v1583_v43 = vpop.eup %1582  ;;  %1608 = vrcp.f32 %v652_v40  ;;  %v654_v44 = vadd.f32 1.0, %v1581_v41  ;;  %v2412_v40 = vld [vmem:[%s2295_s30 + $0xc8] sm:$0xff] }
  0x4c   : > { %v1585_v45 = vpop.eup %1584  ;;  %1610 = vrcp.f32 %v653_v42  ;;  %v655_v46 = vadd.f32 1.0, %v1583_v43  ;;  %v1408_v42 = vmul.f32 -1.442695, %v2400_v33  ;;  %v2418_v43 = vld [vmem:[%s2295_s30 + $0xd0] sm:$0xff] }
  0x4d   : > { %v1587_v47 = vpop.eup %1586  ;;  %1612 = vrcp.f32 %v654_v44  ;;  %v656_v48 = vadd.f32 1.0, %v1585_v45  ;;  %v1409_v45 = vmul.f32 -1.442695, %v2406_v37 }
  0x4e   : > { %v1589_v49 = vpop.eup %1588  ;;  %1614 = vrcp.f32 %v655_v46  ;;  %v657_v50 = vadd.f32 1.0, %v1587_v47  ;;  %v2424_v46 = vld [vmem:[%s2295_s30 + $0xd8] sm:$0xff] }
  0x4f   : > { %v1591_v51 = vpop.eup %1590  ;;  %1616 = vrcp.f32 %v656_v48  ;;  %v658_v52 = vadd.f32 1.0, %v1589_v49  ;;  %v1410_v48 = vmul.f32 -1.442695, %v2412_v40  ;;  %v2430_v49 = vld [vmem:[%s2295_s30 + $0xe0] sm:$0xff] }
  0x50   : > { %v1593_v53 = vpop.eup %1592  ;;  %1618 = vrcp.f32 %v657_v50  ;;  %v659_v54 = vadd.f32 1.0, %v1591_v51  ;;  %v1411_v51 = vmul.f32 -1.442695, %v2418_v43 }
  0x51   : > { %v1595_v55 = vpop.eup %1594  ;;  %1620 = vrcp.f32 %v658_v52  ;;  %v660_v56 = vadd.f32 1.0, %v1593_v53  ;;  %v2436_v52 = vld [vmem:[%s2295_s30 + $0xe8] sm:$0xff] }
  0x52   : > { %v1597_v58 = vpop.eup %1596  ;;  %1622 = vrcp.f32 %v659_v54  ;;  %v661_v59 = vadd.f32 1.0, %v1595_v55  ;;  %v1412_v54 = vmul.f32 -1.442695, %v2424_v46  ;;  %v2442_v55 = vld [vmem:[%s2295_s30 + $0xf0] sm:$0xff] }
  0x53   : > { %v1599_v61 = vpop.eup %1598  ;;  %1624 = vrcp.f32 %v660_v56  ;;  %v662_v62 = vadd.f32 1.0, %v1597_v58  ;;  %v1413_v58 = vmul.f32 -1.442695, %v2430_v49 }
  0x54   : > { %v1601_v3 = vpop.eup %1600  ;;  %1626 = vrcp.f32 %v661_v59  ;;  %v663_v4 = vadd.f32 1.0, %v1599_v61  ;;  %v2448_v59 = vld [vmem:[%s2295_s30 + $0xf8] sm:$0xff] }
  0x55   : > { %v1603_v10 = vpop.eup %1602  ;;  %1628 = vrcp.f32 %v662_v62  ;;  %v664_v11 = vadd.f32 1.0, %v1601_v3  ;;  %v1414_v62 = vmul.f32 -1.442695, %v2436_v52 }
  0x56   : > { %v1605_v19 = vpop.eup %1604  ;;  %v1033_v21 = vmul.f32 %v1603_v10, %v2302_v0  ;;  %1630 = vrcp.f32 %v663_v4 }
  0x57   : > { %v1607_v27 = vpop.eup %1606  ;;  %v1034_v29 = vmul.f32 %v1605_v19, %v2305_v1  ;;  %1632 = vrcp.f32 %v664_v11  ;;  %v1405_v1 = vmul.f32 -1.442695, %v2380_v16 }
  0x58   : > { %v1609_v32 = vpop.eup %1608  ;;  %1161 = vst [vmem:[%s2394_s17] sm:$0xff] %v1033_v21  ;;  %v1035_v0 = vmul.f32 %v1607_v27, %v2308_v2  ;;  %1634 = vpow2.f32 %v1401_v5 }
  0x59   : > { %v1611_v34 = vpop.eup %1610  ;;  %1162 = vst [vmem:[%s2394_s17 + $0x8] sm:$0xff] %v1034_v29  ;;  %v1036_v35 = vmul.f32 %v1609_v32, %v2314_v6  ;;  %1636 = vpow2.f32 %v1402_v15 }
  0x5a   : > { %v1613_v38 = vpop.eup %1612  ;;  %1163 = vst [vmem:[%s2394_s17 + $0x10] sm:$0xff] %v1035_v0  ;;  %v1037_v2 = vmul.f32 %v1611_v34, %v2317_v7  ;;  %1638 = vpow2.f32 %v1403_v23 }
  0x5b   : > { %v1615_v41 = vpop.eup %1614  ;;  %1164 = vst [vmem:[%s2394_s17 + $0x18] sm:$0xff] %v1036_v35  ;;  %v1038_v6 = vmul.f32 %v1613_v38, %v2320_v8  ;;  %1640 = vpow2.f32 %v1404_v30 }
  0x5c   : > { %v1617_v44 = vpop.eup %1616  ;;  %1165 = vst [vmem:[%s2394_s17 + $0x20] sm:$0xff] %v1037_v2  ;;  %v1039_v7 = vmul.f32 %v1615_v41, %v2326_v12  ;;  %1642 = vpow2.f32 %v1405_v1 }
  0x5d   : > { %v1619_v47 = vpop.eup %1618  ;;  %1166 = vst [vmem:[%s2394_s17 + $0x28] sm:$0xff] %v1038_v6  ;;  %v1040_v8 = vmul.f32 %v1617_v44, %v2329_v13  ;;  %1644 = vpow2.f32 %v1406_v36 }
  0x5e   : > { %v1621_v50 = vpop.eup %1620  ;;  %1167 = vst [vmem:[%s2394_s17 + $0x30] sm:$0xff] %v1039_v7  ;;  %v1041_v12 = vmul.f32 %v1619_v47, %v2332_v14  ;;  %1646 = vpow2.f32 %v1407_v39 }
  0x5f   : > { %v1623_v53 = vpop.eup %1622  ;;  %1168 = vst [vmem:[%s2394_s17 + $0x38] sm:$0xff] %v1040_v8  ;;  %v1042_v13 = vmul.f32 %v1621_v50, %v2337_v17  ;;  %1648 = vpow2.f32 %v1408_v42  ;;  %v2466_v8 = vld [vmem:[%s2295_s30 + $0x100] sm:$0xff] }
  0x60   : > { %v1625_v56 = vpop.eup %1624  ;;  %1169 = vst [vmem:[%s2394_s17 + $0x40] sm:$0xff] %v1041_v12  ;;  %v1043_v14 = vmul.f32 %v1623_v53, %v2340_v18  ;;  %1650 = vpow2.f32 %v1409_v45  ;;  %v1415_v18 = vmul.f32 -1.442695, %v2442_v55  ;;  %v2469_v12 = vld [vmem:[%s2295_s30 + $0x108] sm:$0xff] }
  0x61   : > { %v1627_v61 = vpop.eup %1626  ;;  %1170 = vst [vmem:[%s2394_s17 + $0x48] sm:$0xff] %v1042_v13  ;;  %v1044_v17 = vmul.f32 %v1625_v56, %v2344_v20  ;;  %1652 = vpow2.f32 %v1410_v48  ;;  %v1416_v20 = vmul.f32 -1.442695, %v2448_v59  ;;  %v2472_v13 = vld [vmem:[%s2295_s30 + $0x110] sm:$0xff] }
  0x62   : > { %v1629_v3 = vpop.eup %1628  ;;  %1171 = vst [vmem:[%s2394_s17 + $0x50] sm:$0xff] %v1043_v14  ;;  %v1045_v4 = vmul.f32 %v1627_v61, %v2348_v22  ;;  %1654 = vpow2.f32 %v1411_v51  ;;  %v1417_v14 = vmul.f32 -1.442695, %v2466_v8 }
  0x63   : > { %v1631_v5 = vpop.eup %1630  ;;  %1172 = vst [vmem:[%s2394_s17 + $0x58] sm:$0xff] %v1044_v17  ;;  %v1046_v10 = vmul.f32 %v1629_v3, %v2352_v24  ;;  %1656 = vpow2.f32 %v1412_v54  ;;  %v2480_v3 = vld [vmem:[%s2295_s30 + $0x120] sm:$0xff] }
  0x64   : > { %v1633_v11 = vpop.eup %1632  ;;  %1173 = vst [vmem:[%s2394_s17 + $0x60] sm:$0xff] %v1045_v4  ;;  %v1047_v15 = vmul.f32 %v1631_v5, %v2356_v26  ;;  %1658 = vpow2.f32 %v1413_v58  ;;  %v2476_v58 = vld [vmem:[%s2295_s30 + $0x118] sm:$0xff]  ;;  %v1419_v5 = vmul.f32 -1.442695, %v2472_v13 }
  0x65   : > { %v1635_v19 = vpop.eup %1634  ;;  %1174 = vst [vmem:[%s2394_s17 + $0x68] sm:$0xff] %v1046_v10  ;;  %v1048_v22 = vmul.f32 %v1633_v11, %v2360_v28  ;;  %1660 = vpow2.f32 %v1414_v62  ;;  %v1418_v62 = vmul.f32 -1.442695, %v2469_v12  ;;  %v2485_v10 = vld [vmem:[%s2295_s30 + $0x128] sm:$0xff] }
  0x66   : > { %v1637_v21 = vpop.eup %1636  ;;  %1175 = vst [vmem:[%s2394_s17 + $0x70] sm:$0xff] %v1047_v15  ;;  %v665_v23 = vadd.f32 1.0, %v1635_v19  ;;  %1662 = vpow2.f32 %v1415_v18  ;;  %v1420_v15 = vmul.f32 -1.442695, %v2476_v58  ;;  %v2490_v19 = vld [vmem:[%s2295_s30 + $0x130] sm:$0xff] }
  0x67   : > { %v1639_v27 = vpop.eup %1638  ;;  %1176 = vst [vmem:[%s2394_s17 + $0x78] sm:$0xff] %v1048_v22  ;;  %v666_v24 = vadd.f32 1.0, %v1637_v21  ;;  %1664 = vpow2.f32 %v1416_v20  ;;  %v1421_v21 = vmul.f32 -1.442695, %v2480_v3 }
  0x68   : > { %v1641_v29 = vpop.eup %1640  ;;  %1666 = vrcp.f32 %v665_v23  ;;  %v667_v30 = vadd.f32 1.0, %v1639_v27  ;;  %v2496_v23 = vld [vmem:[%s2295_s30 + $0x138] sm:$0xff] }
  0x69   : > { %v1643_v32 = vpop.eup %1642  ;;  %1668 = vrcp.f32 %v666_v24  ;;  %v668_v26 = vadd.f32 1.0, %v1641_v29  ;;  %v1422_v24 = vmul.f32 -1.442695, %v2485_v10  ;;  %v2502_v29 = vld [vmem:[%s2295_s30 + $0x140] sm:$0xff] }
  0x6a   : > { %v1645_v0 = vpop.eup %1644  ;;  %1670 = vrcp.f32 %v667_v30  ;;  %v669_v1 = vadd.f32 1.0, %v1643_v32  ;;  %v1423_v32 = vmul.f32 -1.442695, %v2490_v19 }
  0x6b   : > { %v1647_v34 = vpop.eup %1646  ;;  %1672 = vrcp.f32 %v668_v26  ;;  %v670_v28 = vadd.f32 1.0, %v1645_v0  ;;  %v2508_v26 = vld [vmem:[%s2295_s30 + $0x148] sm:$0xff] }
  0x6c   : > { %v1649_v35 = vpop.eup %1648  ;;  %1674 = vrcp.f32 %v669_v1  ;;  %v671_v36 = vadd.f32 1.0, %v1647_v34  ;;  %v1424_v1 = vmul.f32 -1.442695, %v2496_v23  ;;  %v2514_v34 = vld [vmem:[%s2295_s30 + $0x150] sm:$0xff] }
  0x6d   : > { %v1651_v38 = vpop.eup %1650  ;;  %1676 = vrcp.f32 %v670_v28  ;;  %v672_v2 = vadd.f32 1.0, %v1649_v35  ;;  %v1425_v35 = vmul.f32 -1.442695, %v2502_v29 }
  0x6e   : > { %v1653_v39 = vpop.eup %1652  ;;  %1678 = vrcp.f32 %v671_v36  ;;  %v673_v41 = vadd.f32 1.0, %v1651_v38  ;;  %v2520_v36 = vld [vmem:[%s2295_s30 + $0x158] sm:$0xff] }
  0x6f   : > { %v1655_v6 = vpop.eup %1654  ;;  %1680 = vrcp.f32 %v672_v2  ;;  %v674_v42 = vadd.f32 1.0, %v1653_v39  ;;  %v1426_v2 = vmul.f32 -1.442695, %v2508_v26  ;;  %v2526_v39 = vld [vmem:[%s2295_s30 + $0x160] sm:$0xff] }
  0x70   : > { %v1657_v44 = vpop.eup %1656  ;;  %1682 = vrcp.f32 %v673_v41  ;;  %v675_v7 = vadd.f32 1.0, %v1655_v6  ;;  %v1427_v6 = vmul.f32 -1.442695, %v2514_v34 }
  0x71   : > { %v1659_v45 = vpop.eup %1658  ;;  %1684 = vrcp.f32 %v674_v42  ;;  %v676_v47 = vadd.f32 1.0, %v1657_v44  ;;  %v2532_v42 = vld [vmem:[%s2295_s30 + $0x168] sm:$0xff] }
  0x72   : > { %v1661_v48 = vpop.eup %1660  ;;  %1686 = vrcp.f32 %v675_v7  ;;  %v677_v50 = vadd.f32 1.0, %v1659_v45  ;;  %v1428_v7 = vmul.f32 -1.442695, %v2520_v36  ;;  %v2538_v45 = vld [vmem:[%s2295_s30 + $0x170] sm:$0xff] }
  0x73   : > { %v1663_v51 = vpop.eup %1662  ;;  %1688 = vrcp.f32 %v676_v47  ;;  %v678_v53 = vadd.f32 1.0, %v1661_v48  ;;  %v1429_v48 = vmul.f32 -1.442695, %v2526_v39 }
  0x74   : > { %v1665_v54 = vpop.eup %1664  ;;  %1690 = vrcp.f32 %v677_v50  ;;  %v679_v56 = vadd.f32 1.0, %v1663_v51  ;;  %v2544_v50 = vld [vmem:[%s2295_s30 + $0x178] sm:$0xff] }
  0x75   : > { %v1667_v61 = vpop.eup %1666  ;;  %1692 = vrcp.f32 %v678_v53  ;;  %v680_v17 = vadd.f32 1.0, %v1665_v54  ;;  %v1430_v53 = vmul.f32 -1.442695, %v2532_v42 }
  0x76   : > { %v1669_v4 = vpop.eup %1668  ;;  %v1049_v18 = vmul.f32 %v1667_v61, %v2366_v57  ;;  %1694 = vrcp.f32 %v679_v56 }
  0x77   : > { %v1671_v20 = vpop.eup %1670  ;;  %v1050_v11 = vmul.f32 %v1669_v4, %v2369_v60  ;;  %1696 = vrcp.f32 %v680_v17 }
  0x78   : > { %v1673_v22 = vpop.eup %1672  ;;  %1177 = vst [vmem:[%s2394_s17 + $0x80] sm:$0xff] %v1049_v18  ;;  %v1051_v57 = vmul.f32 %v1671_v20, %v2372_v63  ;;  %1698 = vpow2.f32 %v1417_v14 }
  0x79   : > { %v1675_v27 = vpop.eup %1674  ;;  %1178 = vst [vmem:[%s2394_s17 + $0x88] sm:$0xff] %v1050_v11  ;;  %v1052_v60 = vmul.f32 %v1673_v22, %v2376_v9  ;;  %1700 = vpow2.f32 %v1418_v62 }
  0x7a   : > { %v1677_v30 = vpop.eup %1676  ;;  %1179 = vst [vmem:[%s2394_s17 + $0x90] sm:$0xff] %v1051_v57  ;;  %v1053_v63 = vmul.f32 %v1675_v27, %v2380_v16  ;;  %1702 = vpow2.f32 %v1419_v5 }
  0x7b   : > { %v1679_v0 = vpop.eup %1678  ;;  %1180 = vst [vmem:[%s2394_s17 + $0x98] sm:$0xff] %v1052_v60  ;;  %v1054_v9 = vmul.f32 %v1677_v30, %v2385_v25  ;;  %1704 = vpow2.f32 %v1420_v15 }
  0x7c   : > { %v1681_v28 = vpop.eup %1680  ;;  %1181 = vst [vmem:[%s2394_s17 + $0xa0] sm:$0xff] %v1053_v63  ;;  %v1055_v16 = vmul.f32 %v1679_v0, %v2390_v31  ;;  %1706 = vpow2.f32 %v1421_v21 }
  0x7d   : > { %v1683_v38 = vpop.eup %1682  ;;  %1182 = vst [vmem:[%s2394_s17 + $0xa8] sm:$0xff] %v1054_v9  ;;  %v1056_v25 = vmul.f32 %v1681_v28, %v2400_v33  ;;  %1708 = vpow2.f32 %v1422_v24 }
  0x7e   : > { %v1685_v41 = vpop.eup %1684  ;;  %1183 = vst [vmem:[%s2394_s17 + $0xb0] sm:$0xff] %v1055_v16  ;;  %v1057_v31 = vmul.f32 %v1683_v38, %v2406_v37  ;;  %1710 = vpow2.f32 %v1423_v32 }
  0x7f   : > { %v1687_v44 = vpop.eup %1686  ;;  %1184 = vst [vmem:[%s2394_s17 + $0xb8] sm:$0xff] %v1056_v25  ;;  %v1058_v33 = vmul.f32 %v1685_v41, %v2412_v40  ;;  %1712 = vpow2.f32 %v1424_v1  ;;  %v2562_v25 = vld [vmem:[%s2295_s30 + $0x180] sm:$0xff] }
  0x80   : > { %v1689_v47 = vpop.eup %1688  ;;  %1185 = vst [vmem:[%s2394_s17 + $0xc0] sm:$0xff] %v1057_v31  ;;  %v1059_v37 = vmul.f32 %v1687_v44, %v2418_v43  ;;  %1714 = vpow2.f32 %v1425_v35  ;;  %v1431_v43 = vmul.f32 -1.442695, %v2538_v45  ;;  %v2565_v31 = vld [vmem:[%s2295_s30 + $0x188] sm:$0xff] }
  0x81   : > { %v1691_v51 = vpop.eup %1690  ;;  %1186 = vst [vmem:[%s2394_s17 + $0xc8] sm:$0xff] %v1058_v33  ;;  %v1060_v40 = vmul.f32 %v1689_v47, %v2424_v46  ;;  %1716 = vpow2.f32 %v1426_v2  ;;  %v1432_v46 = vmul.f32 -1.442695, %v2544_v50  ;;  %v2568_v33 = vld [vmem:[%s2295_s30 + $0x190] sm:$0xff] }
  0x82   : > { %v1693_v54 = vpop.eup %1692  ;;  %1187 = vst [vmem:[%s2394_s17 + $0xd0] sm:$0xff] %v1059_v37  ;;  %v1061_v56 = vmul.f32 %v1691_v51, %v2430_v49  ;;  %1718 = vpow2.f32 %v1427_v6  ;;  %v1433_v37 = vmul.f32 -1.442695, %v2562_v25 }
  0x83   : > { %v1695_v14 = vpop.eup %1694  ;;  %1188 = vst [vmem:[%s2394_s17 + $0xd8] sm:$0xff] %v1060_v40  ;;  %v1062_v61 = vmul.f32 %v1693_v54, %v2436_v52  ;;  %1720 = vpow2.f32 %v1428_v7  ;;  %v2576_v54 = vld [vmem:[%s2295_s30 + $0x1a0] sm:$0xff] }
  0x84   : > { %v1697_v17 = vpop.eup %1696  ;;  %1189 = vst [vmem:[%s2394_s17 + $0xe0] sm:$0xff] %v1061_v56  ;;  %v1063_v62 = vmul.f32 %v1695_v14, %v2442_v55  ;;  %1722 = vpow2.f32 %v1429_v48  ;;  %v2572_v48 = vld [vmem:[%s2295_s30 + $0x198] sm:$0xff]  ;;  %v1435_v14 = vmul.f32 -1.442695, %v2568_v33 }
  0x85   : > { %v1699_v4 = vpop.eup %1698  ;;  %1190 = vst [vmem:[%s2394_s17 + $0xe8] sm:$0xff] %v1062_v61  ;;  %v1064_v49 = vmul.f32 %v1697_v17, %v2448_v59  ;;  %1724 = vpow2.f32 %v1430_v53  ;;  %v1434_v53 = vmul.f32 -1.442695, %v2565_v31  ;;  %v2581_v61 = vld [vmem:[%s2295_s30 + $0x1a8] sm:$0xff] }
  0x86   : > { %v1701_v18 = vpop.eup %1700  ;;  %1191 = vst [vmem:[%s2394_s17 + $0xf0] sm:$0xff] %v1063_v62  ;;  %v681_v5 = vadd.f32 1.0, %v1699_v4  ;;  %1726 = vpow2.f32 %v1431_v43  ;;  %v1436_v62 = vmul.f32 -1.442695, %v2572_v48  ;;  %v2586_v4 = vld [vmem:[%s2295_s30 + $0x1b0] sm:$0xff] }
  0x87   : > { %v1703_v20 = vpop.eup %1702  ;;  %1192 = vst [vmem:[%s2394_s17 + $0xf8] sm:$0xff] %v1064_v49  ;;  %v682_v52 = vadd.f32 1.0, %v1701_v18  ;;  %1728 = vpow2.f32 %v1432_v46  ;;  %v1437_v18 = vmul.f32 -1.442695, %v2576_v54 }
  0x88   : > { %v1705_v11 = vpop.eup %1704  ;;  %1730 = vrcp.f32 %v681_v5  ;;  %v683_v15 = vadd.f32 1.0, %v1703_v20  ;;  %v2592_v5 = vld [vmem:[%s2295_s30 + $0x1b8] sm:$0xff] }
  0x89   : > { %v1707_v22 = vpop.eup %1706  ;;  %1732 = vrcp.f32 %v682_v52  ;;  %v684_v55 = vadd.f32 1.0, %v1705_v11  ;;  %v1438_v52 = vmul.f32 -1.442695, %v2581_v61  ;;  %v2598_v11 = vld [vmem:[%s2295_s30 + $0x1c0] sm:$0xff] }
  0x8a   : > { %v1709_v57 = vpop.eup %1708  ;;  %1734 = vrcp.f32 %v683_v15  ;;  %v685_v21 = vadd.f32 1.0, %v1707_v22  ;;  %v1439_v22 = vmul.f32 -1.442695, %v2586_v4 }
  0x8b   : > { %v1711_v27 = vpop.eup %1710  ;;  %1736 = vrcp.f32 %v684_v55  ;;  %v686_v59 = vadd.f32 1.0, %v1709_v57  ;;  %v2604_v55 = vld [vmem:[%s2295_s30 + $0x1c8] sm:$0xff] }
  0x8c   : > { %v1713_v60 = vpop.eup %1712  ;;  %1738 = vrcp.f32 %v685_v21  ;;  %v687_v24 = vadd.f32 1.0, %v1711_v27  ;;  %v1440_v21 = vmul.f32 -1.442695, %v2592_v5  ;;  %v2610_v27 = vld [vmem:[%s2295_s30 + $0x1d0] sm:$0xff] }
  0x8d   : > { %v1715_v30 = vpop.eup %1714  ;;  %1740 = vrcp.f32 %v686_v59  ;;  %v688_v63 = vadd.f32 1.0, %v1713_v60  ;;  %v1441_v60 = vmul.f32 -1.442695, %v2598_v11 }
  0x8e   : > { %v1717_v32 = vpop.eup %1716  ;;  %1742 = vrcp.f32 %v687_v24  ;;  %v689_v0 = vadd.f32 1.0, %v1715_v30  ;;  %v2616_v24 = vld [vmem:[%s2295_s30 + $0x1d8] sm:$0xff] }
  0x8f   : > { %v1719_v9 = vpop.eup %1718  ;;  %1744 = vrcp.f32 %v688_v63  ;;  %v690_v1 = vadd.f32 1.0, %v1717_v32  ;;  %v1442_v63 = vmul.f32 -1.442695, %v2604_v55  ;;  %v2622_v32 = vld [vmem:[%s2295_s30 + $0x1e0] sm:$0xff] }
  0x90   : > { %v1721_v28 = vpop.eup %1720  ;;  %1746 = vrcp.f32 %v689_v0  ;;  %v691_v16 = vadd.f32 1.0, %v1719_v9  ;;  %v1443_v9 = vmul.f32 -1.442695, %v2610_v27 }
  0x91   : > { %v1723_v35 = vpop.eup %1722  ;;  %1748 = vrcp.f32 %v690_v1  ;;  %v692_v38 = vadd.f32 1.0, %v1721_v28  ;;  %v2628_v1 = vld [vmem:[%s2295_s30 + $0x1e8] sm:$0xff] }
  0x92   : > { %v1725_v2 = vpop.eup %1724  ;;  %1750 = vrcp.f32 %v691_v16  ;;  %v693_v41 = vadd.f32 1.0, %v1723_v35  ;;  %v1444_v16 = vmul.f32 -1.442695, %v2616_v24  ;;  %v2634_v35 = vld [vmem:[%s2295_s30 + $0x1f0] sm:$0xff] }
  0x93   : > { %v1727_v6 = vpop.eup %1726  ;;  %1752 = vrcp.f32 %v692_v38  ;;  %v694_v44 = vadd.f32 1.0, %v1725_v2  ;;  %v1445_v2 = vmul.f32 -1.442695, %v2622_v32 }
  0x94   : > { %v1729_v7 = vpop.eup %1728  ;;  %1754 = vrcp.f32 %v693_v41  ;;  %v695_v47 = vadd.f32 1.0, %v1727_v6  ;;  %v2640_v41 = vld [vmem:[%s2295_s30 + $0x1f8] sm:$0xff] }
  0x95   : > { %v1731_v51 = vpop.eup %1730  ;;  %1756 = vrcp.f32 %v694_v44  ;;  %v696_v40 = vadd.f32 1.0, %v1729_v7  ;;  %v1446_v44 = vmul.f32 -1.442695, %v2628_v1 }
  0x96   : > { %v1733_v56 = vpop.eup %1732  ;;  %v1065_v43 = vmul.f32 %v1731_v51, %v2466_v8  ;;  %1758 = vrcp.f32 %v695_v47 }
  0x97   : > { %v1735_v46 = vpop.eup %1734  ;;  %v1066_v17 = vmul.f32 %v1733_v56, %v2469_v12  ;;  %1760 = vrcp.f32 %v696_v40 }
  0x98   : > { %v1737_v49 = vpop.eup %1736  ;;  %1193 = vst [vmem:[%s2394_s17 + $0x100] sm:$0xff] %v1065_v43  ;;  %v1067_v8 = vmul.f32 %v1735_v46, %v2472_v13  ;;  %1762 = vpow2.f32 %v1433_v37 }
  0x99   : > { %v1739_v20 = vpop.eup %1738  ;;  %1194 = vst [vmem:[%s2394_s17 + $0x108] sm:$0xff] %v1066_v17  ;;  %v1068_v12 = vmul.f32 %v1737_v49, %v2476_v58  ;;  %1764 = vpow2.f32 %v1434_v53 }
  0x9a   : > { %v1741_v15 = vpop.eup %1740  ;;  %1195 = vst [vmem:[%s2394_s17 + $0x110] sm:$0xff] %v1067_v8  ;;  %v1069_v13 = vmul.f32 %v1739_v20, %v2480_v3  ;;  %1766 = vpow2.f32 %v1435_v14 }
  0x9b   : > { %v1743_v57 = vpop.eup %1742  ;;  %1196 = vst [vmem:[%s2394_s17 + $0x118] sm:$0xff] %v1068_v12  ;;  %v1070_v58 = vmul.f32 %v1741_v15, %v2485_v10  ;;  %1768 = vpow2.f32 %v1436_v62 }
  0x9c   : > { %v1745_v59 = vpop.eup %1744  ;;  %1197 = vst [vmem:[%s2394_s17 + $0x120] sm:$0xff] %v1069_v13  ;;  %v1071_v3 = vmul.f32 %v1743_v57, %v2490_v19  ;;  %1770 = vpow2.f32 %v1437_v18 }
  0x9d   : > { %v1747_v30 = vpop.eup %1746  ;;  %1198 = vst [vmem:[%s2394_s17 + $0x128] sm:$0xff] %v1070_v58  ;;  %v1072_v10 = vmul.f32 %v1745_v59, %v2496_v23  ;;  %1772 = vpow2.f32 %v1438_v52 }
  0x9e   : > { %v1749_v0 = vpop.eup %1748  ;;  %1199 = vst [vmem:[%s2394_s17 + $0x130] sm:$0xff] %v1071_v3  ;;  %v1073_v19 = vmul.f32 %v1747_v30, %v2502_v29  ;;  %1774 = vpow2.f32 %v1439_v22 }
  0x9f   : > { %v1751_v28 = vpop.eup %1750  ;;  %1200 = vst [vmem:[%s2394_s17 + $0x138] sm:$0xff] %v1072_v10  ;;  %v1074_v23 = vmul.f32 %v1749_v0, %v2508_v26  ;;  %1776 = vpow2.f32 %v1440_v21  ;;  %v2658_v10 = vld [vmem:[%s2295_s30 + $0x200] sm:$0xff] }
  0xa0   : > { %v1753_v38 = vpop.eup %1752  ;;  %1201 = vst [vmem:[%s2394_s17 + $0x140] sm:$0xff] %v1073_v19  ;;  %v1075_v29 = vmul.f32 %v1751_v28, %v2514_v34  ;;  %1778 = vpow2.f32 %v1441_v60  ;;  %v1447_v34 = vmul.f32 -1.442695, %v2634_v35  ;;  %v2661_v19 = vld [vmem:[%s2295_s30 + $0x208] sm:$0xff] }
  0xa1   : > { %v1755_v6 = vpop.eup %1754  ;;  %1202 = vst [vmem:[%s2394_s17 + $0x148] sm:$0xff] %v1074_v23  ;;  %v1076_v26 = vmul.f32 %v1753_v38, %v2520_v36  ;;  %1780 = vpow2.f32 %v1442_v63  ;;  %v1448_v36 = vmul.f32 -1.442695, %v2640_v41  ;;  %v2664_v23 = vld [vmem:[%s2295_s30 + $0x210] sm:$0xff] }
  0xa2   : > { %v1757_v7 = vpop.eup %1756  ;;  %1203 = vst [vmem:[%s2394_s17 + $0x150] sm:$0xff] %v1075_v29  ;;  %v1077_v47 = vmul.f32 %v1755_v6, %v2526_v39  ;;  %1782 = vpow2.f32 %v1443_v9  ;;  %v1449_v29 = vmul.f32 -1.442695, %v2658_v10 }
  0xa3   : > { %v1759_v37 = vpop.eup %1758  ;;  %1204 = vst [vmem:[%s2394_s17 + $0x158] sm:$0xff] %v1076_v26  ;;  %v1078_v51 = vmul.f32 %v1757_v7, %v2532_v42  ;;  %1784 = vpow2.f32 %v1444_v16  ;;  %v2672_v7 = vld [vmem:[%s2295_s30 + $0x220] sm:$0xff] }
  0xa4   : > { %v1761_v40 = vpop.eup %1760  ;;  %1205 = vst [vmem:[%s2394_s17 + $0x160] sm:$0xff] %v1077_v47  ;;  %v1079_v53 = vmul.f32 %v1759_v37, %v2538_v45  ;;  %1786 = vpow2.f32 %v1445_v2  ;;  %v2668_v2 = vld [vmem:[%s2295_s30 + $0x218] sm:$0xff]  ;;  %v1451_v37 = vmul.f32 -1.442695, %v2664_v23 }
  0xa5   : > { %v1763_v56 = vpop.eup %1762  ;;  %1206 = vst [vmem:[%s2394_s17 + $0x168] sm:$0xff] %v1078_v51  ;;  %v1080_v39 = vmul.f32 %v1761_v40, %v2544_v50  ;;  %1788 = vpow2.f32 %v1446_v44  ;;  %v1450_v44 = vmul.f32 -1.442695, %v2661_v19  ;;  %v2677_v51 = vld [vmem:[%s2295_s30 + $0x228] sm:$0xff] }
  0xa6   : > { %v1765_v43 = vpop.eup %1764  ;;  %1207 = vst [vmem:[%s2394_s17 + $0x170] sm:$0xff] %v1079_v53  ;;  %v697_v14 = vadd.f32 1.0, %v1763_v56  ;;  %1790 = vpow2.f32 %v1447_v34  ;;  %v1452_v53 = vmul.f32 -1.442695, %v2668_v2  ;;  %v2682_v56 = vld [vmem:[%s2295_s30 + $0x230] sm:$0xff] }
  0xa7   : > { %v1767_v46 = vpop.eup %1766  ;;  %1208 = vst [vmem:[%s2394_s17 + $0x178] sm:$0xff] %v1080_v39  ;;  %v698_v42 = vadd.f32 1.0, %v1765_v43  ;;  %1792 = vpow2.f32 %v1448_v36  ;;  %v1453_v43 = vmul.f32 -1.442695, %v2672_v7 }
  0xa8   : > { %v1769_v17 = vpop.eup %1768  ;;  %1794 = vrcp.f32 %v697_v14  ;;  %v699_v62 = vadd.f32 1.0, %v1767_v46  ;;  %v2688_v14 = vld [vmem:[%s2295_s30 + $0x238] sm:$0xff] }
  0xa9   : > { %v1771_v49 = vpop.eup %1770  ;;  %1796 = vrcp.f32 %v698_v42  ;;  %v700_v45 = vadd.f32 1.0, %v1769_v17  ;;  %v1454_v42 = vmul.f32 -1.442695, %v2677_v51  ;;  %v2694_v17 = vld [vmem:[%s2295_s30 + $0x240] sm:$0xff] }
  0xaa   : > { %v1773_v8 = vpop.eup %1772  ;;  %1798 = vrcp.f32 %v699_v62  ;;  %v701_v18 = vadd.f32 1.0, %v1771_v49  ;;  %v1455_v49 = vmul.f32 -1.442695, %v2682_v56 }
  0xab   : > { %v1775_v20 = vpop.eup %1774  ;;  %1800 = vrcp.f32 %v700_v45  ;;  %v702_v50 = vadd.f32 1.0, %v1773_v8  ;;  %v2700_v45 = vld [vmem:[%s2295_s30 + $0x248] sm:$0xff] }
  0xac   : > { %v1777_v12 = vpop.eup %1776  ;;  %1802 = vrcp.f32 %v701_v18  ;;  %v703_v52 = vadd.f32 1.0, %v1775_v20  ;;  %v1456_v18 = vmul.f32 -1.442695, %v2688_v14  ;;  %v2706_v20 = vld [vmem:[%s2295_s30 + $0x250] sm:$0xff] }
  0xad   : > { %v1779_v15 = vpop.eup %1778  ;;  %1804 = vrcp.f32 %v702_v50  ;;  %v704_v13 = vadd.f32 1.0, %v1777_v12  ;;  %v1457_v12 = vmul.f32 -1.442695, %v2694_v17 }
  0xae   : > { %v1781_v22 = vpop.eup %1780  ;;  %1806 = vrcp.f32 %v703_v52  ;;  %v705_v57 = vadd.f32 1.0, %v1779_v15  ;;  %v2712_v52 = vld [vmem:[%s2295_s30 + $0x258] sm:$0xff] }
  0xaf   : > { %v1783_v58 = vpop.eup %1782  ;;  %1808 = vrcp.f32 %v704_v13  ;;  %v706_v21 = vadd.f32 1.0, %v1781_v22  ;;  %v1458_v13 = vmul.f32 -1.442695, %v2700_v45  ;;  %v2718_v22 = vld [vmem:[%s2295_s30 + $0x260] sm:$0xff] }
  0xb0   : > { %v1785_v59 = vpop.eup %1784  ;;  %1810 = vrcp.f32 %v705_v57  ;;  %v707_v3 = vadd.f32 1.0, %v1783_v58  ;;  %v1459_v58 = vmul.f32 -1.442695, %v2706_v20 }
  0xb1   : > { %v1787_v60 = vpop.eup %1786  ;;  %1812 = vrcp.f32 %v706_v21  ;;  %v708_v30 = vadd.f32 1.0, %v1785_v59  ;;  %v2724_v21 = vld [vmem:[%s2295_s30 + $0x268] sm:$0xff] }
  0xb2   : > { %v1789_v63 = vpop.eup %1788  ;;  %1814 = vrcp.f32 %v707_v3  ;;  %v709_v0 = vadd.f32 1.0, %v1787_v60  ;;  %v1460_v3 = vmul.f32 -1.442695, %v2712_v52  ;;  %v2730_v60 = vld [vmem:[%s2295_s30 + $0x270] sm:$0xff] }
  0xb3   : > { %v1791_v9 = vpop.eup %1790  ;;  %1816 = vrcp.f32 %v708_v30  ;;  %v710_v28 = vadd.f32 1.0, %v1789_v63  ;;  %v1461_v63 = vmul.f32 -1.442695, %v2718_v22 }
  0xb4   : > { %v1793_v16 = vpop.eup %1792  ;;  %1818 = vrcp.f32 %v709_v0  ;;  %v711_v38 = vadd.f32 1.0, %v1791_v9  ;;  %v2736_v0 = vld [vmem:[%s2295_s30 + $0x278] sm:$0xff] }
  0xb5   : > { %v1795_v6 = vpop.eup %1794  ;;  %1820 = vrcp.f32 %v710_v28  ;;  %v712_v26 = vadd.f32 1.0, %v1793_v16  ;;  %v1462_v28 = vmul.f32 -1.442695, %v2724_v21 }
  0xb6   : > { %v1797_v47 = vpop.eup %1796  ;;  %v1081_v34 = vmul.f32 %v1795_v6, %v2562_v25  ;;  %1822 = vrcp.f32 %v711_v38 }
  0xb7   : > { %v1799_v36 = vpop.eup %1798  ;;  %v1082_v40 = vmul.f32 %v1797_v47, %v2565_v31  ;;  %1824 = vrcp.f32 %v712_v26 }
  0xb8   : > { %v1801_v39 = vpop.eup %1800  ;;  %1209 = vst [vmem:[%s2394_s17 + $0x180] sm:$0xff] %v1081_v34  ;;  %v1083_v25 = vmul.f32 %v1799_v36, %v2568_v33  ;;  %1826 = vpow2.f32 %v1449_v29 }
  0xb9   : > { %v1803_v46 = vpop.eup %1802  ;;  %1210 = vst [vmem:[%s2394_s17 + $0x188] sm:$0xff] %v1082_v40  ;;  %v1084_v31 = vmul.f32 %v1801_v39, %v2572_v48  ;;  %1828 = vpow2.f32 %v1450_v44 }
  0xba   : > { %v1805_v62 = vpop.eup %1804  ;;  %1211 = vst [vmem:[%s2394_s17 + $0x190] sm:$0xff] %v1083_v25  ;;  %v1085_v33 = vmul.f32 %v1803_v46, %v2576_v54  ;;  %1830 = vpow2.f32 %v1451_v37 }
  0xbb   : > { %v1807_v8 = vpop.eup %1806  ;;  %1212 = vst [vmem:[%s2394_s17 + $0x198] sm:$0xff] %v1084_v31  ;;  %v1086_v48 = vmul.f32 %v1805_v62, %v2581_v61  ;;  %1832 = vpow2.f32 %v1452_v53 }
  0xbc   : > { %v1809_v50 = vpop.eup %1808  ;;  %1213 = vst [vmem:[%s2394_s17 + $0x1a0] sm:$0xff] %v1085_v33  ;;  %v1087_v54 = vmul.f32 %v1807_v8, %v2586_v4  ;;  %1834 = vpow2.f32 %v1453_v43 }
  0xbd   : > { %v1811_v15 = vpop.eup %1810  ;;  %1214 = vst [vmem:[%s2394_s17 + $0x1a8] sm:$0xff] %v1086_v48  ;;  %v1088_v61 = vmul.f32 %v1809_v50, %v2592_v5  ;;  %1836 = vpow2.f32 %v1454_v42 }
  0xbe   : > { %v1813_v57 = vpop.eup %1812  ;;  %1215 = vst [vmem:[%s2394_s17 + $0x1b0] sm:$0xff] %v1087_v54  ;;  %v1089_v4 = vmul.f32 %v1811_v15, %v2598_v11  ;;  %1838 = vpow2.f32 %v1455_v49 }
  0xbf   : > { %v1815_v59 = vpop.eup %1814  ;;  %1216 = vst [vmem:[%s2394_s17 + $0x1b8] sm:$0xff] %v1088_v61  ;;  %v1090_v5 = vmul.f32 %v1813_v57, %v2604_v55  ;;  %1840 = vpow2.f32 %v1456_v18  ;;  %v2754_v61 = vld [vmem:[%s2295_s30 + $0x280] sm:$0xff] }
  0xc0   : > { %v1817_v30 = vpop.eup %1816  ;;  %1217 = vst [vmem:[%s2394_s17 + $0x1c0] sm:$0xff] %v1089_v4  ;;  %v1091_v11 = vmul.f32 %v1815_v59, %v2610_v27  ;;  %1842 = vpow2.f32 %v1457_v12  ;;  %v1463_v27 = vmul.f32 -1.442695, %v2730_v60  ;;  %v2757_v4 = vld [vmem:[%s2295_s30 + $0x288] sm:$0xff] }
  0xc1   : > { %v1819_v9 = vpop.eup %1818  ;;  %1218 = vst [vmem:[%s2394_s17 + $0x1c8] sm:$0xff] %v1090_v5  ;;  %v1092_v55 = vmul.f32 %v1817_v30, %v2616_v24  ;;  %1844 = vpow2.f32 %v1458_v13  ;;  %v1464_v24 = vmul.f32 -1.442695, %v2736_v0  ;;  %v2760_v5 = vld [vmem:[%s2295_s30 + $0x290] sm:$0xff] }
  0xc2   : > { %v1821_v16 = vpop.eup %1820  ;;  %1219 = vst [vmem:[%s2394_s17 + $0x1d0] sm:$0xff] %v1091_v11  ;;  %v1093_v38 = vmul.f32 %v1819_v9, %v2622_v32  ;;  %1846 = vpow2.f32 %v1459_v58  ;;  %v1465_v11 = vmul.f32 -1.442695, %v2754_v61 }
  0xc3   : > { %v1823_v29 = vpop.eup %1822  ;;  %1220 = vst [vmem:[%s2394_s17 + $0x1d8] sm:$0xff] %v1092_v55  ;;  %v1094_v6 = vmul.f32 %v1821_v16, %v2628_v1  ;;  %1848 = vpow2.f32 %v1460_v3  ;;  %v2768_v16 = vld [vmem:[%s2295_s30 + $0x2a0] sm:$0xff] }
  0xc4   : > { %v1825_v26 = vpop.eup %1824  ;;  %1221 = vst [vmem:[%s2394_s17 + $0x1e0] sm:$0xff] %v1093_v38  ;;  %v1095_v44 = vmul.f32 %v1823_v29, %v2634_v35  ;;  %1850 = vpow2.f32 %v1461_v63  ;;  %v2764_v63 = vld [vmem:[%s2295_s30 + $0x298] sm:$0xff]  ;;  %v1467_v29 = vmul.f32 -1.442695, %v2760_v5 }
  0xc5   : > { %v1827_v47 = vpop.eup %1826  ;;  %1222 = vst [vmem:[%s2394_s17 + $0x1e8] sm:$0xff] %v1094_v6  ;;  %v1096_v32 = vmul.f32 %v1825_v26, %v2640_v41  ;;  %1852 = vpow2.f32 %v1462_v28  ;;  %v1466_v28 = vmul.f32 -1.442695, %v2757_v4  ;;  %v2773_v6 = vld [vmem:[%s2295_s30 + $0x2a8] sm:$0xff] }
  0xc6   : > { %v1829_v34 = vpop.eup %1828  ;;  %1223 = vst [vmem:[%s2394_s17 + $0x1f0] sm:$0xff] %v1095_v44  ;;  %v713_v37 = vadd.f32 1.0, %v1827_v47  ;;  %1854 = vpow2.f32 %v1463_v27  ;;  %v1468_v44 = vmul.f32 -1.442695, %v2764_v63  ;;  %v2778_v47 = vld [vmem:[%s2295_s30 + $0x2b0] sm:$0xff] }
  0xc7   : > { %v1831_v36 = vpop.eup %1830  ;;  %1224 = vst [vmem:[%s2394_s17 + $0x1f8] sm:$0xff] %v1096_v32  ;;  %v714_v1 = vadd.f32 1.0, %v1829_v34  ;;  %1856 = vpow2.f32 %v1464_v24  ;;  %v1469_v34 = vmul.f32 -1.442695, %v2768_v16 }
  0xc8   : > { %v1833_v40 = vpop.eup %1832  ;;  %1858 = vrcp.f32 %v713_v37  ;;  %v715_v53 = vadd.f32 1.0, %v1831_v36  ;;  %v2784_v37 = vld [vmem:[%s2295_s30 + $0x2b8] sm:$0xff] }
  0xc9   : > { %v1835_v39 = vpop.eup %1834  ;;  %1860 = vrcp.f32 %v714_v1  ;;  %v716_v35 = vadd.f32 1.0, %v1833_v40  ;;  %v1470_v1 = vmul.f32 -1.442695, %v2773_v6  ;;  %v2790_v40 = vld [vmem:[%s2295_s30 + $0x2c0] sm:$0xff] }
  0xca   : > { %v1837_v25 = vpop.eup %1836  ;;  %1862 = vrcp.f32 %v715_v53  ;;  %v717_v43 = vadd.f32 1.0, %v1835_v39  ;;  %v1471_v39 = vmul.f32 -1.442695, %v2778_v47 }
  0xcb   : > { %v1839_v46 = vpop.eup %1838  ;;  %1864 = vrcp.f32 %v716_v35  ;;  %v718_v41 = vadd.f32 1.0, %v1837_v25  ;;  %v2796_v35 = vld [vmem:[%s2295_s30 + $0x2c8] sm:$0xff] }
  0xcc   : > { %v1841_v31 = vpop.eup %1840  ;;  %1866 = vrcp.f32 %v717_v43  ;;  %v719_v42 = vadd.f32 1.0, %v1839_v46  ;;  %v1472_v43 = vmul.f32 -1.442695, %v2784_v37  ;;  %v2802_v46 = vld [vmem:[%s2295_s30 + $0x2d0] sm:$0xff] }
  0xcd   : > { %v1843_v62 = vpop.eup %1842  ;;  %1868 = vrcp.f32 %v718_v41  ;;  %v720_v33 = vadd.f32 1.0, %v1841_v31  ;;  %v1473_v31 = vmul.f32 -1.442695, %v2790_v40 }
  0xce   : > { %v1845_v49 = vpop.eup %1844  ;;  %1870 = vrcp.f32 %v719_v42  ;;  %v721_v8 = vadd.f32 1.0, %v1843_v62  ;;  %v2808_v42 = vld [vmem:[%s2295_s30 + $0x2d8] sm:$0xff] }
  0xcf   : > { %v1847_v48 = vpop.eup %1846  ;;  %1872 = vrcp.f32 %v720_v33  ;;  %v722_v18 = vadd.f32 1.0, %v1845_v49  ;;  %v1474_v33 = vmul.f32 -1.442695, %v2796_v35  ;;  %v2814_v49 = vld [vmem:[%s2295_s30 + $0x2e0] sm:$0xff] }
  0xd0   : > { %v1849_v50 = vpop.eup %1848  ;;  %1874 = vrcp.f32 %v721_v8  ;;  %v723_v54 = vadd.f32 1.0, %v1847_v48  ;;  %v1475_v48 = vmul.f32 -1.442695, %v2802_v46 }
  0xd1   : > { %v1851_v12 = vpop.eup %1850  ;;  %1876 = vrcp.f32 %v722_v18  ;;  %v724_v15 = vadd.f32 1.0, %v1849_v50  ;;  %v2820_v18 = vld [vmem:[%s2295_s30 + $0x2e8] sm:$0xff] }
  0xd2   : > { %v1853_v13 = vpop.eup %1852  ;;  %1878 = vrcp.f32 %v723_v54  ;;  %v725_v57 = vadd.f32 1.0, %v1851_v12  ;;  %v1476_v54 = vmul.f32 -1.442695, %v2808_v42  ;;  %v2826_v12 = vld [vmem:[%s2295_s30 + $0x2f0] sm:$0xff] }
  0xd3   : > { %v1855_v58 = vpop.eup %1854  ;;  %1880 = vrcp.f32 %v724_v15  ;;  %v726_v59 = vadd.f32 1.0, %v1853_v13  ;;  %v1477_v13 = vmul.f32 -1.442695, %v2814_v49 }
  0xd4   : > { %v1857_v3 = vpop.eup %1856  ;;  %1882 = vrcp.f32 %v725_v57  ;;  %v727_v30 = vadd.f32 1.0, %v1855_v58  ;;  %v2832_v57 = vld [vmem:[%s2295_s30 + $0x2f8] sm:$0xff] }
  0xd5   : > { %v1859_v9 = vpop.eup %1858  ;;  %1884 = vrcp.f32 %v726_v59  ;;  %v728_v55 = vadd.f32 1.0, %v1857_v3  ;;  %v1478_v59 = vmul.f32 -1.442695, %v2820_v18 }
  0xd6   : > { %v1861_v38 = vpop.eup %1860  ;;  %v1097_v27 = vmul.f32 %v1859_v9, %v2658_v10  ;;  %1886 = vrcp.f32 %v727_v30 }
  0xd7   : > { %v1863_v24 = vpop.eup %1862  ;;  %v1098_v26 = vmul.f32 %v1861_v38, %v2661_v19  ;;  %1888 = vrcp.f32 %v728_v55 }
  0xd8   : > { %v1865_v32 = vpop.eup %1864  ;;  %1225 = vst [vmem:[%s2394_s17 + $0x200] sm:$0xff] %v1097_v27  ;;  %v1099_v10 = vmul.f32 %v1863_v24, %v2664_v23  ;;  %1890 = vpow2.f32 %v1465_v11 }
  0xd9   : > { %v1867_v36 = vpop.eup %1866  ;;  %1226 = vst [vmem:[%s2394_s17 + $0x208] sm:$0xff] %v1098_v26  ;;  %v1100_v19 = vmul.f32 %v1865_v32, %v2668_v2  ;;  %1892 = vpow2.f32 %v1466_v28 }
  0xda   : > { %v1869_v53 = vpop.eup %1868  ;;  %1227 = vst [vmem:[%s2394_s17 + $0x210] sm:$0xff] %v1099_v10  ;;  %v1101_v23 = vmul.f32 %v1867_v36, %v2672_v7  ;;  %1894 = vpow2.f32 %v1467_v29 }
  0xdb   : > { %v1871_v25 = vpop.eup %1870  ;;  %1228 = vst [vmem:[%s2394_s17 + $0x218] sm:$0xff] %v1100_v19  ;;  %v1102_v2 = vmul.f32 %v1869_v53, %v2677_v51  ;;  %1896 = vpow2.f32 %v1468_v44 }
  0xdc   : > { %v1873_v41 = vpop.eup %1872  ;;  %1229 = vst [vmem:[%s2394_s17 + $0x220] sm:$0xff] %v1101_v23  ;;  %v1103_v7 = vmul.f32 %v1871_v25, %v2682_v56  ;;  %1898 = vpow2.f32 %v1469_v34 }
  0xdd   : > { %v1875_v62 = vpop.eup %1874  ;;  %1230 = vst [vmem:[%s2394_s17 + $0x228] sm:$0xff] %v1102_v2  ;;  %v1104_v51 = vmul.f32 %v1873_v41, %v2688_v14  ;;  %1900 = vpow2.f32 %v1470_v1 }
  0xde   : > { %v1877_v8 = vpop.eup %1876  ;;  %1231 = vst [vmem:[%s2394_s17 + $0x230] sm:$0xff] %v1103_v7  ;;  %v1105_v56 = vmul.f32 %v1875_v62, %v2694_v17  ;;  %1902 = vpow2.f32 %v1471_v39 }
  0xdf   : > { %v1879_v50 = vpop.eup %1878  ;;  %1232 = vst [vmem:[%s2394_s17 + $0x238] sm:$0xff] %v1104_v51  ;;  %v1106_v14 = vmul.f32 %v1877_v8, %v2700_v45  ;;  %1904 = vpow2.f32 %v1472_v43  ;;  %v2850_v51 = vld [vmem:[%s2295_s30 + $0x300] sm:$0xff] }
  0xe0   : > { %v1881_v15 = vpop.eup %1880  ;;  %1233 = vst [vmem:[%s2394_s17 + $0x240] sm:$0xff] %v1105_v56  ;;  %v1107_v17 = vmul.f32 %v1879_v50, %v2706_v20  ;;  %1906 = vpow2.f32 %v1473_v31  ;;  %v1479_v20 = vmul.f32 -1.442695, %v2826_v12  ;;  %v2853_v56 = vld [vmem:[%s2295_s30 + $0x308] sm:$0xff] }
  0xe1   : > { %v1883_v58 = vpop.eup %1882  ;;  %1234 = vst [vmem:[%s2394_s17 + $0x248] sm:$0xff] %v1106_v14  ;;  %v1108_v45 = vmul.f32 %v1881_v15, %v2712_v52  ;;  %1908 = vpow2.f32 %v1474_v33  ;;  %v1480_v52 = vmul.f32 -1.442695, %v2832_v57  ;;  %v2856_v14 = vld [vmem:[%s2295_s30 + $0x310] sm:$0xff] }
  0xe2   : > { %v1885_v3 = vpop.eup %1884  ;;  %1235 = vst [vmem:[%s2394_s17 + $0x250] sm:$0xff] %v1107_v17  ;;  %v1109_v30 = vmul.f32 %v1883_v58, %v2718_v22  ;;  %1910 = vpow2.f32 %v1475_v48  ;;  %v1481_v17 = vmul.f32 -1.442695, %v2850_v51 }
  0xe3   : > { %v1887_v11 = vpop.eup %1886  ;;  %1236 = vst [vmem:[%s2394_s17 + $0x258] sm:$0xff] %v1108_v45  ;;  %v1110_v9 = vmul.f32 %v1885_v3, %v2724_v21  ;;  %1912 = vpow2.f32 %v1476_v54  ;;  %v2864_v3 = vld [vmem:[%s2295_s30 + $0x320] sm:$0xff] }
  0xe4   : > { %v1889_v55 = vpop.eup %1888  ;;  %1237 = vst [vmem:[%s2394_s17 + $0x260] sm:$0xff] %v1109_v30  ;;  %v1111_v28 = vmul.f32 %v1887_v11, %v2730_v60  ;;  %1914 = vpow2.f32 %v1477_v13  ;;  %v2860_v13 = vld [vmem:[%s2295_s30 + $0x318] sm:$0xff]  ;;  %v1483_v11 = vmul.f32 -1.442695, %v2856_v14 }
  0xe5   : > { %v1891_v38 = vpop.eup %1890  ;;  %1238 = vst [vmem:[%s2394_s17 + $0x268] sm:$0xff] %v1110_v9  ;;  %v1112_v22 = vmul.f32 %v1889_v55, %v2736_v0  ;;  %1916 = vpow2.f32 %v1478_v59  ;;  %v1482_v59 = vmul.f32 -1.442695, %v2853_v56  ;;  %v2869_v9 = vld [vmem:[%s2295_s30 + $0x328] sm:$0xff] }
  0xe6   : > { %v1893_v27 = vpop.eup %1892  ;;  %1239 = vst [vmem:[%s2394_s17 + $0x270] sm:$0xff] %v1111_v28  ;;  %v729_v29 = vadd.f32 1.0, %v1891_v38  ;;  %1918 = vpow2.f32 %v1479_v20  ;;  %v1484_v28 = vmul.f32 -1.442695, %v2860_v13  ;;  %v2874_v38 = vld [vmem:[%s2295_s30 + $0x330] sm:$0xff] }
  0xe7   : > { %v1895_v24 = vpop.eup %1894  ;;  %1240 = vst [vmem:[%s2394_s17 + $0x278] sm:$0xff] %v1112_v22  ;;  %v730_v21 = vadd.f32 1.0, %v1893_v27  ;;  %1920 = vpow2.f32 %v1480_v52  ;;  %v1485_v27 = vmul.f32 -1.442695, %v2864_v3 }
  0xe8   : > { %v1897_v26 = vpop.eup %1896  ;;  %1922 = vrcp.f32 %v729_v29  ;;  %v731_v44 = vadd.f32 1.0, %v1895_v24  ;;  %v2880_v29 = vld [vmem:[%s2295_s30 + $0x338] sm:$0xff] }
  0xe9   : > { %v1899_v32 = vpop.eup %1898  ;;  %1924 = vrcp.f32 %v730_v21  ;;  %v732_v60 = vadd.f32 1.0, %v1897_v26  ;;  %v1486_v21 = vmul.f32 -1.442695, %v2869_v9  ;;  %v2886_v26 = vld [vmem:[%s2295_s30 + $0x340] sm:$0xff] }
  0xea   : > { %v1901_v10 = vpop.eup %1900  ;;  %1926 = vrcp.f32 %v731_v44  ;;  %v733_v34 = vadd.f32 1.0, %v1899_v32  ;;  %v1487_v32 = vmul.f32 -1.442695, %v2874_v38 }
  0xeb   : > { %v1903_v36 = vpop.eup %1902  ;;  %1928 = vrcp.f32 %v732_v60  ;;  %v734_v0 = vadd.f32 1.0, %v1901_v10  ;;  %v2892_v60 = vld [vmem:[%s2295_s30 + $0x348] sm:$0xff] }
  0xec   : > { %v1905_v19 = vpop.eup %1904  ;;  %1930 = vrcp.f32 %v733_v34  ;;  %v735_v1 = vadd.f32 1.0, %v1903_v36  ;;  %v1488_v34 = vmul.f32 -1.442695, %v2880_v29  ;;  %v2898_v36 = vld [vmem:[%s2295_s30 + $0x350] sm:$0xff] }
  0xed   : > { %v1907_v53 = vpop.eup %1906  ;;  %1932 = vrcp.f32 %v734_v0  ;;  %v736_v23 = vadd.f32 1.0, %v1905_v19  ;;  %v1489_v19 = vmul.f32 -1.442695, %v2886_v26 }
  0xee   : > { %v1909_v39 = vpop.eup %1908  ;;  %1934 = vrcp.f32 %v735_v1  ;;  %v737_v25 = vadd.f32 1.0, %v1907_v53  ;;  %v2904_v1 = vld [vmem:[%s2295_s30 + $0x358] sm:$0xff] }
  0xef   : > { %v1911_v2 = vpop.eup %1910  ;;  %1936 = vrcp.f32 %v736_v23  ;;  %v738_v43 = vadd.f32 1.0, %v1909_v39  ;;  %v1490_v23 = vmul.f32 -1.442695, %v2892_v60  ;;  %v2910_v39 = vld [vmem:[%s2295_s30 + $0x360] sm:$0xff] }
  0xf0   : > { %v1913_v41 = vpop.eup %1912  ;;  %1938 = vrcp.f32 %v737_v25  ;;  %v739_v7 = vadd.f32 1.0, %v1911_v2  ;;  %v1491_v2 = vmul.f32 -1.442695, %v2898_v36 }
  0xf1   : > { %v1915_v31 = vpop.eup %1914  ;;  %1940 = vrcp.f32 %v738_v43  ;;  %v740_v62 = vadd.f32 1.0, %v1913_v41  ;;  %v2916_v43 = vld [vmem:[%s2295_s30 + $0x368] sm:$0xff] }
  0xf2   : > { %v1917_v33 = vpop.eup %1916  ;;  %1942 = vrcp.f32 %v739_v7  ;;  %v741_v8 = vadd.f32 1.0, %v1915_v31  ;;  %v1492_v7 = vmul.f32 -1.442695, %v2904_v1  ;;  %v2922_v31 = vld [vmem:[%s2295_s30 + $0x370] sm:$0xff] }
  0xf3   : > { %v1919_v48 = vpop.eup %1918  ;;  %1944 = vrcp.f32 %v740_v62  ;;  %v742_v50 = vadd.f32 1.0, %v1917_v33  ;;  %v1493_v33 = vmul.f32 -1.442695, %v2910_v39 }
  0xf4   : > { %v1921_v54 = vpop.eup %1920  ;;  %1946 = vrcp.f32 %v741_v8  ;;  %v743_v15 = vadd.f32 1.0, %v1919_v48  ;;  %v2928_v8 = vld [vmem:[%s2295_s30 + $0x378] sm:$0xff] }
  0xf5   : > { %v1923_v58 = vpop.eup %1922  ;;  %1948 = vrcp.f32 %v742_v50  ;;  %v744_v45 = vadd.f32 1.0, %v1921_v54  ;;  %v1494_v50 = vmul.f32 -1.442695, %v2916_v43 }
  0xf6   : > { %v1925_v30 = vpop.eup %1924  ;;  %v1113_v20 = vmul.f32 %v1923_v58, %v2754_v61  ;;  %1950 = vrcp.f32 %v743_v15 }
  0xf7   : > { %v1927_v52 = vpop.eup %1926  ;;  %v1114_v55 = vmul.f32 %v1925_v30, %v2757_v4  ;;  %1952 = vrcp.f32 %v744_v45 }
  0xf8   : > { %v1929_v22 = vpop.eup %1928  ;;  %1241 = vst [vmem:[%s2394_s17 + $0x280] sm:$0xff] %v1113_v20  ;;  %v1115_v61 = vmul.f32 %v1927_v52, %v2760_v5  ;;  %1954 = vpow2.f32 %v1481_v17 }
  0xf9   : > { %v1931_v24 = vpop.eup %1930  ;;  %1242 = vst [vmem:[%s2394_s17 + $0x288] sm:$0xff] %v1114_v55  ;;  %v1116_v4 = vmul.f32 %v1929_v22, %v2764_v63  ;;  %1956 = vpow2.f32 %v1482_v59 }
  0xfa   : > { %v1933_v44 = vpop.eup %1932  ;;  %1243 = vst [vmem:[%s2394_s17 + $0x290] sm:$0xff] %v1115_v61  ;;  %v1117_v5 = vmul.f32 %v1931_v24, %v2768_v16  ;;  %1958 = vpow2.f32 %v1483_v11 }
  0xfb   : > { %v1935_v10 = vpop.eup %1934  ;;  %1244 = vst [vmem:[%s2394_s17 + $0x298] sm:$0xff] %v1116_v4  ;;  %v1118_v63 = vmul.f32 %v1933_v44, %v2773_v6  ;;  %1960 = vpow2.f32 %v1484_v28 }
  0xfc   : > { %v1937_v0 = vpop.eup %1936  ;;  %1245 = vst [vmem:[%s2394_s17 + $0x2a0] sm:$0xff] %v1117_v5  ;;  %v1119_v16 = vmul.f32 %v1935_v10, %v2778_v47  ;;  %1962 = vpow2.f32 %v1485_v27 }
  0xfd   : > { %v1939_v53 = vpop.eup %1938  ;;  %1246 = vst [vmem:[%s2394_s17 + $0x2a8] sm:$0xff] %v1118_v63  ;;  %v1120_v6 = vmul.f32 %v1937_v0, %v2784_v37  ;;  %1964 = vpow2.f32 %v1486_v21 }
  0xfe   : > { %v1941_v25 = vpop.eup %1940  ;;  %1247 = vst [vmem:[%s2394_s17 + $0x2b0] sm:$0xff] %v1119_v16  ;;  %v1121_v47 = vmul.f32 %v1939_v53, %v2790_v40  ;;  %1966 = vpow2.f32 %v1487_v32 }
  0xff   : > { %v1943_v41 = vpop.eup %1942  ;;  %1248 = vst [vmem:[%s2394_s17 + $0x2b8] sm:$0xff] %v1120_v6  ;;  %v1122_v37 = vmul.f32 %v1941_v25, %v2796_v35  ;;  %1968 = vpow2.f32 %v1488_v34  ;;  %v2946_v6 = vld [vmem:[%s2295_s30 + $0x380] sm:$0xff] }
 0x100   : > { %v1945_v62 = vpop.eup %1944  ;;  %1249 = vst [vmem:[%s2394_s17 + $0x2c0] sm:$0xff] %v1121_v47  ;;  %v1123_v40 = vmul.f32 %v1943_v41, %v2802_v46  ;;  %1970 = vpow2.f32 %v1489_v19  ;;  %v1495_v46 = vmul.f32 -1.442695, %v2922_v31  ;;  %v2949_v47 = vld [vmem:[%s2295_s30 + $0x388] sm:$0xff] }
 0x101   : > { %v1947_v48 = vpop.eup %1946  ;;  %1250 = vst [vmem:[%s2394_s17 + $0x2c8] sm:$0xff] %v1122_v37  ;;  %v1124_v35 = vmul.f32 %v1945_v62, %v2808_v42  ;;  %1972 = vpow2.f32 %v1490_v23  ;;  %v1496_v42 = vmul.f32 -1.442695, %v2928_v8  ;;  %v2952_v37 = vld [vmem:[%s2295_s30 + $0x390] sm:$0xff] }
 0x102   : > { %v1949_v54 = vpop.eup %1948  ;;  %1251 = vst [vmem:[%s2394_s17 + $0x2d0] sm:$0xff] %v1123_v40  ;;  %v1125_v15 = vmul.f32 %v1947_v48, %v2814_v49  ;;  %1974 = vpow2.f32 %v1491_v2  ;;  %v1497_v40 = vmul.f32 -1.442695, %v2946_v6 }
 0x103   : > { %v1951_v17 = vpop.eup %1950  ;;  %1252 = vst [vmem:[%s2394_s17 + $0x2d8] sm:$0xff] %v1124_v35  ;;  %v1126_v58 = vmul.f32 %v1949_v54, %v2820_v18  ;;  %1976 = vpow2.f32 %v1492_v7  ;;  %v2960_v54 = vld [vmem:[%s2295_s30 + $0x3a0] sm:$0xff] }
 0x104   : > { %v1953_v45 = vpop.eup %1952  ;;  %1253 = vst [vmem:[%s2394_s17 + $0x2e0] sm:$0xff] %v1125_v15  ;;  %v1127_v59 = vmul.f32 %v1951_v17, %v2826_v12  ;;  %1978 = vpow2.f32 %v1493_v33  ;;  %v2956_v33 = vld [vmem:[%s2295_s30 + $0x398] sm:$0xff]  ;;  %v1499_v17 = vmul.f32 -1.442695, %v2952_v37 }
 0x105   : > { %v1955_v30 = vpop.eup %1954  ;;  %1254 = vst [vmem:[%s2394_s17 + $0x2e8] sm:$0xff] %v1126_v58  ;;  %v1128_v49 = vmul.f32 %v1953_v45, %v2832_v57  ;;  %1980 = vpow2.f32 %v1494_v50  ;;  %v1498_v50 = vmul.f32 -1.442695, %v2949_v47  ;;  %v2965_v58 = vld [vmem:[%s2295_s30 + $0x3a8] sm:$0xff] }
 0x106   : > { %v1957_v20 = vpop.eup %1956  ;;  %1255 = vst [vmem:[%s2394_s17 + $0x2f0] sm:$0xff] %v1127_v59  ;;  %v745_v11 = vadd.f32 1.0, %v1955_v30  ;;  %1982 = vpow2.f32 %v1495_v46  ;;  %v1500_v59 = vmul.f32 -1.442695, %v2956_v33  ;;  %v2970_v30 = vld [vmem:[%s2295_s30 + $0x3b0] sm:$0xff] }
 0x107   : > { %v1959_v52 = vpop.eup %1958  ;;  %1256 = vst [vmem:[%s2394_s17 + $0x2f8] sm:$0xff] %v1128_v49  ;;  %v746_v18 = vadd.f32 1.0, %v1957_v20  ;;  %1984 = vpow2.f32 %v1496_v42  ;;  %v1501_v20 = vmul.f32 -1.442695, %v2960_v54 }
 0x108   : > { %v1961_v55 = vpop.eup %1960  ;;  %1986 = vrcp.f32 %v745_v11  ;;  %v747_v28 = vadd.f32 1.0, %v1959_v52  ;;  %v2976_v11 = vld [vmem:[%s2295_s30 + $0x3b8] sm:$0xff] }
 0x109   : > { %v1963_v22 = vpop.eup %1962  ;;  %1988 = vrcp.f32 %v746_v18  ;;  %v748_v12 = vadd.f32 1.0, %v1961_v55  ;;  %v1502_v18 = vmul.f32 -1.442695, %v2965_v58  ;;  %v2982_v55 = vld [vmem:[%s2295_s30 + $0x3c0] sm:$0xff] }
 0x10a   : > { %v1965_v61 = vpop.eup %1964  ;;  %1990 = vrcp.f32 %v747_v28  ;;  %v749_v27 = vadd.f32 1.0, %v1963_v22  ;;  %v1503_v22 = vmul.f32 -1.442695, %v2970_v30 }
 0x10b   : > { %v1967_v24 = vpop.eup %1966  ;;  %1992 = vrcp.f32 %v748_v12  ;;  %v750_v57 = vadd.f32 1.0, %v1965_v61  ;;  %v2988_v12 = vld [vmem:[%s2295_s30 + $0x3c8] sm:$0xff] }
 0x10c   : > { %v1969_v4 = vpop.eup %1968  ;;  %1994 = vrcp.f32 %v749_v27  ;;  %v751_v21 = vadd.f32 1.0, %v1967_v24  ;;  %v1504_v27 = vmul.f32 -1.442695, %v2976_v11  ;;  %v2994_v24 = vld [vmem:[%s2295_s30 + $0x3d0] sm:$0xff] }
 0x10d   : > { %v1971_v44 = vpop.eup %1970  ;;  %1996 = vrcp.f32 %v750_v57  ;;  %v752_v5 = vadd.f32 1.0, %v1969_v4  ;;  %v1505_v4 = vmul.f32 -1.442695, %v2982_v55 }
 0x10e   : > { %v1973_v32 = vpop.eup %1972  ;;  %1998 = vrcp.f32 %v751_v21  ;;  %v753_v10 = vadd.f32 1.0, %v1971_v44  ;;  %v3000_v21 = vld [vmem:[%s2295_s30 + $0x3d8] sm:$0xff] }
 0x10f   : > { %v1975_v63 = vpop.eup %1974  ;;  %2000 = vrcp.f32 %v752_v5  ;;  %v754_v34 = vadd.f32 1.0, %v1973_v32  ;;  %v1506_v5 = vmul.f32 -1.442695, %v2988_v12  ;;  %v3006_v32 = vld [vmem:[%s2295_s30 + $0x3e0] sm:$0xff] }
 0x110   : > { %v1977_v0 = vpop.eup %1976  ;;  %2002 = vrcp.f32 %v753_v10  ;;  %v755_v16 = vadd.f32 1.0, %v1975_v63  ;;  %v1507_v63 = vmul.f32 -1.442695, %v2994_v24 }
 0x111   : > { %v1979_v19 = vpop.eup %1978  ;;  %2004 = vrcp.f32 %v754_v34  ;;  %v756_v53 = vadd.f32 1.0, %v1977_v0  ;;  %v3012_v34 = vld [vmem:[%s2295_s30 + $0x3e8] sm:$0xff] }
 0x112   : > { %v1981_v23 = vpop.eup %1980  ;;  %2006 = vrcp.f32 %v755_v16  ;;  %v757_v25 = vadd.f32 1.0, %v1979_v19  ;;  %v1508_v16 = vmul.f32 -1.442695, %v3000_v21  ;;  %v3018_v19 = vld [vmem:[%s2295_s30 + $0x3f0] sm:$0xff] }
 0x113   : > { %v1983_v2 = vpop.eup %1982  ;;  %2008 = vrcp.f32 %v756_v53  ;;  %v758_v41 = vadd.f32 1.0, %v1981_v23  ;;  %v1509_v23 = vmul.f32 -1.442695, %v3006_v32 }
 0x114   : > { %v1985_v7 = vpop.eup %1984  ;;  %2010 = vrcp.f32 %v757_v25  ;;  %v759_v62 = vadd.f32 1.0, %v1983_v2  ;;  %v3024_v25 = vld [vmem:[%s2295_s30 + $0x3f8] sm:$0xff] }
 0x115   : > { %v1987_v48 = vpop.eup %1986  ;;  %2012 = vrcp.f32 %v758_v41  ;;  %v760_v35 = vadd.f32 1.0, %v1985_v7  ;;  %v1510_v41 = vmul.f32 -1.442695, %v3012_v34 }
 0x116   : > { %v1989_v15 = vpop.eup %1988  ;;  %v1129_v46 = vmul.f32 %v1987_v48, %v2850_v51  ;;  %2014 = vrcp.f32 %v759_v62 }
 0x117   : > { %v1991_v42 = vpop.eup %1990  ;;  %v1130_v45 = vmul.f32 %v1989_v15, %v2853_v56  ;;  %2016 = vrcp.f32 %v760_v35 }
 0x118   : > { %v1993_v49 = vpop.eup %1992  ;;  %1257 = vst [vmem:[%s2394_s17 + $0x300] sm:$0xff] %v1129_v46  ;;  %v1131_v51 = vmul.f32 %v1991_v42, %v2856_v14  ;;  %2018 = vpow2.f32 %v1497_v40 }
 0x119   : > { %v1995_v52 = vpop.eup %1994  ;;  %1258 = vst [vmem:[%s2394_s17 + $0x308] sm:$0xff] %v1130_v45  ;;  %v1132_v56 = vmul.f32 %v1993_v49, %v2860_v13  ;;  %2020 = vpow2.f32 %v1498_v50 }
 0x11a   : > { %v1997_v28 = vpop.eup %1996  ;;  %1259 = vst [vmem:[%s2394_s17 + $0x310] sm:$0xff] %v1131_v51  ;;  %v1133_v14 = vmul.f32 %v1995_v52, %v2864_v3  ;;  %2022 = vpow2.f32 %v1499_v17 }
 0x11b   : > { %v1999_v61 = vpop.eup %1998  ;;  %1260 = vst [vmem:[%s2394_s17 + $0x318] sm:$0xff] %v1132_v56  ;;  %v1134_v13 = vmul.f32 %v1997_v28, %v2869_v9  ;;  %2024 = vpow2.f32 %v1500_v59 }
 0x11c   : > { %v2001_v57 = vpop.eup %2000  ;;  %1261 = vst [vmem:[%s2394_s17 + $0x320] sm:$0xff] %v1133_v14  ;;  %v1135_v3 = vmul.f32 %v1999_v61, %v2874_v38  ;;  %2026 = vpow2.f32 %v1501_v20 }
 0x11d   : > { %v2003_v44 = vpop.eup %2002  ;;  %1262 = vst [vmem:[%s2394_s17 + $0x328] sm:$0xff] %v1134_v13  ;;  %v1136_v9 = vmul.f32 %v2001_v57, %v2880_v29  ;;  %2028 = vpow2.f32 %v1502_v18 }
 0x11e   : > { %v2005_v10 = vpop.eup %2004  ;;  %1263 = vst [vmem:[%s2394_s17 + $0x330] sm:$0xff] %v1135_v3  ;;  %v1137_v38 = vmul.f32 %v2003_v44, %v2886_v26  ;;  %2030 = vpow2.f32 %v1503_v22 }
 0x11f   : > { %v2007_v0 = vpop.eup %2006  ;;  %1264 = vst [vmem:[%s2394_s17 + $0x338] sm:$0xff] %v1136_v9  ;;  %v1138_v29 = vmul.f32 %v2005_v10, %v2892_v60  ;;  %2032 = vpow2.f32 %v1504_v27 }
 0x120   : > { %v2009_v53 = vpop.eup %2008  ;;  %1265 = vst [vmem:[%s2394_s17 + $0x340] sm:$0xff] %v1137_v38  ;;  %v1139_v26 = vmul.f32 %v2007_v0, %v2898_v36  ;;  %2034 = vpow2.f32 %v1505_v4  ;;  %v1511_v36 = vmul.f32 -1.442695, %v3018_v19 }
 0x121   : > { %v2011_v2 = vpop.eup %2010  ;;  %1266 = vst [vmem:[%s2394_s17 + $0x348] sm:$0xff] %v1138_v29  ;;  %v1140_v60 = vmul.f32 %v2009_v53, %v2904_v1  ;;  %2036 = vpow2.f32 %v1506_v5  ;;  %v1512_v1 = vmul.f32 -1.442695, %v3024_v25 }
 0x122   : > { %v2013_v7 = vpop.eup %2012  ;;  %1267 = vst [vmem:[%s2394_s17 + $0x350] sm:$0xff] %v1139_v26  ;;  %v1141_v62 = vmul.f32 %v2011_v2, %v2910_v39  ;;  %2038 = vpow2.f32 %v1507_v63 }
 0x123   : > { %v2015_v40 = vpop.eup %2014  ;;  %1268 = vst [vmem:[%s2394_s17 + $0x358] sm:$0xff] %v1140_v60  ;;  %v1142_v48 = vmul.f32 %v2013_v7, %v2916_v43  ;;  %2040 = vpow2.f32 %v1508_v16 }
 0x124   : > { %v2017_v35 = vpop.eup %2016  ;;  %1269 = vst [vmem:[%s2394_s17 + $0x360] sm:$0xff] %v1141_v62  ;;  %v1143_v50 = vmul.f32 %v2015_v40, %v2922_v31  ;;  %2042 = vpow2.f32 %v1509_v23 }
 0x125   : > { %v2019_v15 = vpop.eup %2018  ;;  %1270 = vst [vmem:[%s2394_s17 + $0x368] sm:$0xff] %v1142_v48  ;;  %v1144_v39 = vmul.f32 %v2017_v35, %v2928_v8  ;;  %2044 = vpow2.f32 %v1510_v41 }
 0x126   : > { %v2021_v46 = vpop.eup %2020  ;;  %1271 = vst [vmem:[%s2394_s17 + $0x370] sm:$0xff] %v1143_v50  ;;  %v761_v17 = vadd.f32 1.0, %v2019_v15  ;;  %2046 = vpow2.f32 %v1511_v36 }
 0x127   : > { %v2023_v42 = vpop.eup %2022  ;;  %1272 = vst [vmem:[%s2394_s17 + $0x378] sm:$0xff] %v1144_v39  ;;  %v762_v43 = vadd.f32 1.0, %v2021_v46  ;;  %2048 = vpow2.f32 %v1512_v1 }
 0x128   : > { %v2025_v45 = vpop.eup %2024  ;;  %2050 = vrcp.f32 %v761_v17  ;;  %v763_v59 = vadd.f32 1.0, %v2023_v42 }
 0x129   : > { %v2027_v49 = vpop.eup %2026  ;;  %2052 = vrcp.f32 %v762_v43  ;;  %v764_v31 = vadd.f32 1.0, %v2025_v45 }
 0x12a   : > { %v2029_v51 = vpop.eup %2028  ;;  %2054 = vrcp.f32 %v763_v59  ;;  %v765_v20 = vadd.f32 1.0, %v2027_v49 }
 0x12b   : > { %v2031_v52 = vpop.eup %2030  ;;  %2056 = vrcp.f32 %v764_v31  ;;  %v766_v8 = vadd.f32 1.0, %v2029_v51 }
 0x12c   : > { %v2033_v56 = vpop.eup %2032  ;;  %2058 = vrcp.f32 %v765_v20  ;;  %v767_v18 = vadd.f32 1.0, %v2031_v52 }
 0x12d   : > { %v2035_v28 = vpop.eup %2034  ;;  %2060 = vrcp.f32 %v766_v8  ;;  %v768_v14 = vadd.f32 1.0, %v2033_v56 }
 0x12e   : > { %v2037_v22 = vpop.eup %2036  ;;  %2062 = vrcp.f32 %v767_v18  ;;  %v769_v61 = vadd.f32 1.0, %v2035_v28 }
 0x12f   : > { %v2039_v13 = vpop.eup %2038  ;;  %2064 = vrcp.f32 %v768_v14  ;;  %v770_v27 = vadd.f32 1.0, %v2037_v22 }
 0x130   : > { %v2041_v57 = vpop.eup %2040  ;;  %2066 = vrcp.f32 %v769_v61  ;;  %v771_v3 = vadd.f32 1.0, %v2039_v13 }
 0x131   : > { %v2043_v4 = vpop.eup %2042  ;;  %2068 = vrcp.f32 %v770_v27  ;;  %v772_v44 = vadd.f32 1.0, %v2041_v57 }
 0x132   : > { %v2045_v9 = vpop.eup %2044  ;;  %2070 = vrcp.f32 %v771_v3  ;;  %v773_v5 = vadd.f32 1.0, %v2043_v4 }
 0x133   : > { %v2047_v10 = vpop.eup %2046  ;;  %2072 = vrcp.f32 %v772_v44  ;;  %v774_v38 = vadd.f32 1.0, %v2045_v9 }
 0x134   : > { %v2049_v63 = vpop.eup %2048  ;;  %2074 = vrcp.f32 %v773_v5  ;;  %v775_v0 = vadd.f32 1.0, %v2047_v10 }
 0x135   : > { %v2051_v29 = vpop.eup %2050  ;;  %2076 = vrcp.f32 %v774_v38  ;;  %v776_v16 = vadd.f32 1.0, %v2049_v63 }
 0x136   : > { %v2053_v53 = vpop.eup %2052  ;;  %v1145_v26 = vmul.f32 %v2051_v29, %v2946_v6  ;;  %2078 = vrcp.f32 %v775_v0 }
 0x137   : > { %v2055_v23 = vpop.eup %2054  ;;  %v1146_v2 = vmul.f32 %v2053_v53, %v2949_v47  ;;  %2080 = vrcp.f32 %v776_v16 }
 0x138   : > { %v2057_v60 = vpop.eup %2056  ;;  %1273 = vst [vmem:[%s2394_s17 + $0x380] sm:$0xff] %v1145_v26  ;;  %v1147_v41 = vmul.f32 %v2055_v23, %v2952_v37 }
 0x139   : > { %v2059_v7 = vpop.eup %2058  ;;  %1274 = vst [vmem:[%s2394_s17 + $0x388] sm:$0xff] %v1146_v2  ;;  %v1148_v62 = vmul.f32 %v2057_v60, %v2956_v33 }
 0x13a   : > { %v2061_v36 = vpop.eup %2060  ;;  %1275 = vst [vmem:[%s2394_s17 + $0x390] sm:$0xff] %v1147_v41  ;;  %v1149_v6 = vmul.f32 %v2059_v7, %v2960_v54 }
 0x13b   : > { %v2063_v40 = vpop.eup %2062  ;;  %1276 = vst [vmem:[%s2394_s17 + $0x398] sm:$0xff] %v1148_v62  ;;  %v1150_v47 = vmul.f32 %v2061_v36, %v2965_v58 }
 0x13c   : > { %v2065_v48 = vpop.eup %2064  ;;  %1277 = vst [vmem:[%s2394_s17 + $0x3a0] sm:$0xff] %v1149_v6  ;;  %v1151_v37 = vmul.f32 %v2063_v40, %v2970_v30 }
 0x13d   : > { %v2067_v1 = vpop.eup %2066  ;;  %1278 = vst [vmem:[%s2394_s17 + $0x3a8] sm:$0xff] %v1150_v47  ;;  %v1152_v33 = vmul.f32 %v2065_v48, %v2976_v11 }
 0x13e   : > { %v2069_v35 = vpop.eup %2068  ;;  %1279 = vst [vmem:[%s2394_s17 + $0x3b0] sm:$0xff] %v1151_v37  ;;  %v1153_v54 = vmul.f32 %v2067_v1, %v2982_v55 }
 0x13f   : > { %v2071_v50 = vpop.eup %2070  ;;  %1280 = vst [vmem:[%s2394_s17 + $0x3b8] sm:$0xff] %v1152_v33  ;;  %v1154_v58 = vmul.f32 %v2069_v35, %v2988_v12 }
 0x140   : > { %v2073_v15 = vpop.eup %2072  ;;  %1281 = vst [vmem:[%s2394_s17 + $0x3c0] sm:$0xff] %v1153_v54  ;;  %v1155_v30 = vmul.f32 %v2071_v50, %v2994_v24 }
 0x141   : > { %v2075_v39 = vpop.eup %2074  ;;  %1282 = vst [vmem:[%s2394_s17 + $0x3c8] sm:$0xff] %v1154_v58  ;;  %v1156_v11 = vmul.f32 %v2073_v15, %v3000_v21 }
 0x142   : > { %v2077_v55 = vpop.eup %2076  ;;  %1283 = vst [vmem:[%s2394_s17 + $0x3d0] sm:$0xff] %v1155_v30  ;;  %v1157_v46 = vmul.f32 %v2075_v39, %v3006_v32 }
 0x143   : > { %v2079_v12 = vpop.eup %2078  ;;  %1284 = vst [vmem:[%s2394_s17 + $0x3d8] sm:$0xff] %v1156_v11  ;;  %v1158_v17 = vmul.f32 %v2077_v55, %v3012_v34 }
 0x144   : > { %v2081_v24 = vpop.eup %2080  ;;  %1285 = vst [vmem:[%s2394_s17 + $0x3e0] sm:$0xff] %v1157_v46  ;;  %v1159_v42 = vmul.f32 %v2079_v12, %v3018_v19 }
 0x145   : > { %1286 = vst [vmem:[%s2394_s17 + $0x3e8] sm:$0xff] %v1158_v17  ;;  %v1160_v21 = vmul.f32 %v2081_v24, %v3024_v25 }
 0x146   : > { %1287 = vst [vmem:[%s2394_s17 + $0x3f0] sm:$0xff] %v1159_v42 }
 0x147   : > { %1288 = vst [vmem:[%s2394_s17 + $0x3f8] sm:$0xff] %v1160_v21 }
 0x148   : > { %2123 = shalt.err (!%p2120_p10)
}
 0x149   : > { %s2124_s13 = scalar_lea.hbm %s3074_s10, 16384  ;;  %s2128_s20 = scalar_lea.hbm %s3124_s1, 32768 }
 0x14a   : > { %p2125_p0 = scmp.ne.s32.totalorder %s3074_s10, %s2124_s13  ;;  %p2129_p1 = scmp.lt.s32.totalorder %s3074_s10, %s3124_s1 }
 0x14b   : > { %p2130_p3 = scmp.lt.s32.totalorder %s2128_s20, %s2124_s13 }
 0x14c   : > { %p2126_p2 = pnand %p2125_p0, %p3133_p12 }
 0x14d   : > { %p2131_p6 = por %p2130_p3, %p2129_p1 }
 0x14e   : > { %p2127_p9 = pneg %p2126_p2 }
 0x150   : > { %p2132_p11 = pnand %p2131_p6, %p2127_p9 }
 0x152   : > { %2135 = shalt.err (!%p2132_p11)
}
 0x153   : > { %s2180_s24 = smov 128   ;;  %s2181_s26 = smov 8  }
 0x154   : > { %1522 = dma.vmem_to_hbm [thread:$0]  (%p3133_p12), %s3076_s27, 16384, %s3074_s10, %s1290_s2, %s2180_s24, %s2180_s24, %s2181_s26  }
 0x155 PF: > { %s1318_s30 = sand.u32 1, %s2162_s6   ;;  %p3134_p13 = scmp.ne.s32.totalorder %s3130_s19, 0 }
 0x156   : > { %p3135_p4 = scmp.ge.s32.totalorder %s2174_s9, 2  ;;  %s1319_s17 = scalar_lea.sflag [#allocation4], %s1318_s30 }
 0x158   : > { %p1529_p5 = pnand %p3135_p4, %p3134_p13 }
 0x15a   : > { %p1530_p7 = pneg %p1529_p5 }
 0x15c   : > { %2157 = dma.done.wait (%p1530_p7), %s1319_s17, 16384  }
 0x15d   : > { %2159 = vsyncadd (%p1530_p7), %s1319_s17, 4294950912  ;;  %p14_p8 = scmp.ge.s32.totalorder %s2217_s12, 4   ;;  %s3136_s6 = smov %s2166_s7 }
 0x15e   : > { %s3137_s7 = smov %s2170_s8  ;;  %s3138_s8 = smov %s2229_s15 }
 0x15f   : > { %s3139_s9 = smov %s2217_s12  ;;  %16 = sbr.rel (!%p14_p8) target bundleno = 5 (0x5), region = 69 }
 0x164   :  { %1324 = vsyncpa [#allocation3], 1 }
 0x165   :  { %1326 = vsyncpa [#allocation3 + $0x1], 1 }
 0x166   :  { %1327 = vsyncpa [#allocation4], 1 }
 0x167   :  { %1329 = vsyncpa [#allocation4 + $0x1], 1 }

</bundles_post_ra>
